<compile_context>
chip_gen: v5e
topology: v5e:2x2
jax: 0.10.0
libtpu: 0.0.40
codegen_flags: <defaults>
</compile_context>

<pallas_src>
import functools

import jax
import jax.numpy as jnp
from jax.experimental import pallas as pl
from jax.experimental.pallas import tpu as pltpu

NUM_CLASSES = 2     # fc2 output width in the PyTorch module
SUBLANE = 8
LANE = 128


def _round_up(x, m):
    return ((x + m - 1) // m) * m


def _pick_chunk(seq_len, target):
    """Largest chunk <= target that divides seq_len."""
    c = max(1, min(target, seq_len))
    while seq_len % c:
        c -= 1
    return c


# ------------- time-chunked LSTM + fused MLP head kernel ---------------------
def fused_lstm_mlp_kernel(x_ref, wih_ref, whh_ref, b_ref,
                          w1_ref, b1_ref, w2_ref, b2_ref,
                          out_ref, gx_scr, h_scr, c_scr,
                          *, chunk_len, batch_pad, hidden_pad):
    T, Bp, Hp = chunk_len, batch_pad, hidden_pad

    @pl.when(pl.program_id(0) == 0)
    def _():
        h_scr[...] = jnp.zeros_like(h_scr)
        c_scr[...] = jnp.zeros_like(c_scr)

    # Hoisted input projection for the whole chunk: one bf16 MXU matmul,
    # f32 accumulation, bias added once.
    gx_scr[...] = (jnp.dot(x_ref[...], wih_ref[...],
                           preferred_element_type=jnp.float32)
                   + b_ref[...])

    def step(t, carry):
        h, c = carry
        base = pl.multiple_of(t * Bp, Bp)
        # whh_ref[...] is read inside the step (one-step live range, streamed
        # from VMEM per matmul instead of held across the unrolled loop).
        gates = gx_scr[pl.ds(base, Bp), :] + jnp.dot(
            h.astype(jnp.bfloat16), whh_ref[...],
            preferred_element_type=jnp.float32)                  # (Bp, 4Hp) f32
        # PyTorch gate order i, f, g, o; each slice is 128-lane aligned.
        i_g = jax.nn.sigmoid(gates[:, 0:Hp])
        f_g = jax.nn.sigmoid(gates[:, Hp:2 * Hp])
        g_g = jnp.tanh(gates[:, 2 * Hp:3 * Hp])
        o_g = jax.nn.sigmoid(gates[:, 3 * Hp:4 * Hp])
        c_new = f_g * c + i_g * g_g
        h_new = o_g * jnp.tanh(c_new)
        return h_new, c_new

    h, c = jax.lax.fori_loop(0, T, step, (h_scr[...], c_scr[...]),
                             unroll=min(8, T))
    h_scr[...] = h
    c_scr[...] = c

    @pl.when(pl.program_id(0) == pl.num_programs(0) - 1)
    def _():
        # Fused MLP head on the already-resident last hidden state.
        hid = jnp.maximum(
            jnp.dot(h.astype(jnp.bfloat16), w1_ref[...],
                    preferred_element_type=jnp.float32) + b1_ref[...], 0.0)
        out_ref[...] = (jnp.dot(hid.astype(jnp.bfloat16), w2_ref[...],
                                preferred_element_type=jnp.float32)
                        + b2_ref[...]).astype(out_ref.dtype)


def fused_lstm_mlp(x_flat, wih_t, whh_t, bias, w1_t, b1, w2_t, b2,
                   *, seq_len, batch_pad, time_chunk=32):
    """x_flat: (S*Bp, Hin_p) time-major bf16 features -> (Bp, Dout_pad) f32."""
    SB, Hin_p = x_flat.shape
    Hp, G = whh_t.shape
    D1 = w1_t.shape[1]
    Dout = w2_t.shape[1]
    Bp = batch_pad
    T = _pick_chunk(seq_len, time_chunk)
    n_chunks = seq_len // T
    TBp = T * Bp

    kernel = functools.partial(fused_lstm_mlp_kernel,
                               chunk_len=T, batch_pad=Bp, hidden_pad=Hp)

    # Scheduling hint for XLA around the custom call.
    flops = 2 * seq_len * Bp * G * (Hin_p + Hp) + 2 * Bp * (Hp * D1 + D1 * Dout)
    transcendentals = 5 * seq_len * Bp * Hp
    bytes_accessed = (SB * Hin_p * 2 + (Hin_p + Hp) * G * 2
                      + Hp * D1 * 2 + D1 * Dout * 2
                      + (G + D1 + Dout) * 4 + Bp * Dout * 4)

    # Explicit scoped-VMEM budget (double-buffered x chunk + weights + scratch).
    vmem_bytes = (2 * TBp * Hin_p * 2 + (Hin_p + Hp) * G * 2
                  + Hp * D1 * 2 + D1 * Dout * 2 + (G + D1 + Dout) * 4
                  + TBp * G * 4 + 2 * Bp * Hp * 4 + 2 * Bp * Dout * 4)
    vmem_limit = max(int(vmem_bytes * 1.5) + (1 << 20), 16 << 20)
    vmem_limit = min(vmem_limit, 100 << 20)

    return pl.pallas_call(
        kernel,
        out_shape=jax.ShapeDtypeStruct((Bp, Dout), jnp.float32),
        grid_spec=pltpu.PrefetchScalarGridSpec(
            num_scalar_prefetch=0,
            grid=(n_chunks,),
            in_specs=[
                pl.BlockSpec((TBp, Hin_p), lambda s: (s, 0)),   # per-chunk features
                pl.BlockSpec((Hin_p, G), lambda s: (0, 0)),     # W_ih^T (resident)
                pl.BlockSpec((Hp, G), lambda s: (0, 0)),        # W_hh^T (resident)
                pl.BlockSpec((1, G), lambda s: (0, 0)),         # combined bias
                pl.BlockSpec((Hp, D1), lambda s: (0, 0)),       # fc1 W^T
                pl.BlockSpec((1, D1), lambda s: (0, 0)),        # fc1 b
                pl.BlockSpec((D1, Dout), lambda s: (0, 0)),     # fc2 W^T (padded)
                pl.BlockSpec((1, Dout), lambda s: (0, 0)),      # fc2 b (padded)
            ],
            out_specs=pl.BlockSpec((Bp, Dout), lambda s: (0, 0)),
            scratch_shapes=[
                pltpu.VMEM((TBp, G), jnp.float32),   # per-chunk input projection
                pltpu.VMEM((Bp, Hp), jnp.float32),   # carried h
                pltpu.VMEM((Bp, Hp), jnp.float32),   # carried c
            ],
        ),
        compiler_params=pltpu.CompilerParams(
            dimension_semantics=("arbitrary",),
            vmem_limit_bytes=vmem_limit),
        cost_estimate=pl.CostEstimate(flops=flops,
                                      transcendentals=transcendentals,
                                      bytes_accessed=bytes_accessed),
    )(x_flat, wih_t, whh_t, bias, w1_t, b1, w2_t, b2)


# ----------------------------- parameters -----------------------------------
def init_raw_params(key, vocab_size, h_in, hidden_dim):
    """PyTorch-layout weights (as nn.LSTM / nn.Linear store them)."""
    ks = jax.random.split(key, 9)
    scale = 0.1
    return {
        "emb":   scale * jax.random.normal(ks[0], (vocab_size, h_in), jnp.float32),
        "w_ih":  scale * jax.random.normal(ks[1], (4 * hidden_dim, h_in), jnp.float32),
        "w_hh":  scale * jax.random.normal(ks[2], (4 * hidden_dim, hidden_dim), jnp.float32),
        "b_ih":  scale * jax.random.normal(ks[3], (4 * hidden_dim,), jnp.float32),
        "b_hh":  scale * jax.random.normal(ks[4], (4 * hidden_dim,), jnp.float32),
        "fc1_w": scale * jax.random.normal(ks[5], (256, hidden_dim), jnp.float32),
        "fc1_b": scale * jax.random.normal(ks[6], (256,), jnp.float32),
        "fc2_w": scale * jax.random.normal(ks[7], (2, 256), jnp.float32),
        "fc2_b": scale * jax.random.normal(ks[8], (2,), jnp.float32),
    }


def prepare_params(raw):
    """One-time: combine biases, pre-transpose, pad to lane-aligned shapes, cast
    MXU operands to bf16 (keep biases f32)."""
    H4, H_in = raw["w_ih"].shape
    H = H4 // 4
    Hp = _round_up(H, LANE)
    Hin_p = _round_up(H_in, LANE)
    Dout = _round_up(NUM_CLASSES, LANE)

    def pad_gate_cols(w_t):                 # (K, 4H) -> (K, 4*Hp), zero per gate
        K = w_t.shape[0]
        return jnp.pad(w_t.reshape(K, 4, H),
                       ((0, 0), (0, 0), (0, Hp - H))).reshape(K, 4 * Hp)

    wih_t = jnp.pad(pad_gate_cols(raw["w_ih"].T),
                    ((0, Hin_p - H_in), (0, 0)))                # (Hin_p, 4Hp)
    whh_t = jnp.pad(pad_gate_cols(raw["w_hh"].T),
                    ((0, Hp - H), (0, 0)))                      # (Hp, 4Hp)
    bias = jnp.pad((raw["b_ih"] + raw["b_hh"]).reshape(4, H),
                   ((0, 0), (0, Hp - H))).reshape(1, 4 * Hp)    # (1, 4Hp) f32
    w1_t = jnp.pad(raw["fc1_w"].T, ((0, Hp - H), (0, 0)))       # (Hp, 256)
    b1 = raw["fc1_b"].reshape(1, -1)                            # (1, 256)
    w2_t = jnp.pad(raw["fc2_w"].T,
                   ((0, 0), (0, Dout - NUM_CLASSES)))           # (256, Dout)
    b2 = jnp.pad(raw["fc2_b"], (0, Dout - NUM_CLASSES)).reshape(1, -1)
    emb = jnp.pad(raw["emb"], ((0, 0), (0, Hin_p - H_in)))      # (V, Hin_p)

    # Padded-gate-lane invariant: with h0=c0=0 these MUST be exactly zero,
    # otherwise padded lanes would leak into the real hidden state.
    assert bool(jnp.all(bias.reshape(4, Hp)[:, H:] == 0.0))
    assert bool(jnp.all(whh_t[H:, :] == 0.0))

    return {"emb": emb.astype(jnp.bfloat16),
            "wih_t": wih_t.astype(jnp.bfloat16),
            "whh_t": whh_t.astype(jnp.bfloat16),
            "bias": bias,
            "w1_t": w1_t.astype(jnp.bfloat16), "b1": b1,
            "w2_t": w2_t.astype(jnp.bfloat16), "b2": b2}


# ----------------------------- model forward --------------------------------
@functools.partial(jax.jit, static_argnames=("time_chunk",))
def hybrid_model_forward(params, input_ids, attention_mask, *, time_chunk=32):
    B, S = input_ids.shape
    Bp = max(_round_up(B, SUBLANE), SUBLANE)
    # Pad batch on the cheap int ids / mask (not on the float features).
    ids_p = jnp.pad(input_ids, ((0, Bp - B), (0, 0)))
    mask_p = jnp.pad(attention_mask, ((0, Bp - B), (0, 0)))

    # RoBERTa stand-in (plain JAX glue): deterministic embedding lookup, masked.
    # The gather is done time-major (ids transposed, ints only), so the flatten
    # below is a free contiguous reshape -- no HBM transpose copy of the features.
    feats = params["emb"][ids_p.T]                                   # (S, Bp, Hin_p) bf16
    feats = feats * mask_p.T[..., None].astype(feats.dtype)
    Hin_p = feats.shape[-1]
    x_flat = feats.reshape(S * Bp, Hin_p)                            # (S*Bp, Hin_p)

    logits_pad = fused_lstm_mlp(
        x_flat, params["wih_t"], params["whh_t"], params["bias"],
        params["w1_t"], params["b1"], params["w2_t"], params["b2"],
        seq_len=S, batch_pad=Bp, time_chunk=time_chunk)              # (Bp, 128)
    return logits_pad[:B, :NUM_CLASSES]                              # (B, 2)


# ----------------------------- pure-JAX reference ---------------------------
def reference_forward(params, input_ids, attention_mask):
    emb = params["emb"].astype(jnp.float32)
    feats = emb[input_ids] * attention_mask[..., None].astype(jnp.float32)
    wih = params["wih_t"].astype(jnp.float32)
    whh = params["whh_t"].astype(jnp.float32)
    Hp = whh.shape[0]
    B, S, _ = feats.shape
    h = jnp.zeros((B, Hp), jnp.float32)
    c = jnp.zeros((B, Hp), jnp.float32)
    for t in range(S):
        g = feats[:, t, :] @ wih + h @ whh + params["bias"]
        i = jax.nn.sigmoid(g[:, :Hp])
        f = jax.nn.sigmoid(g[:, Hp:2 * Hp])
        gg = jnp.tanh(g[:, 2 * Hp:3 * Hp])
        o = jax.nn.sigmoid(g[:, 3 * Hp:4 * Hp])
        c = f * c + i * gg
        h = o * jnp.tanh(c)
    hid = jnp.maximum(h @ params["w1_t"].astype(jnp.float32) + params["b1"], 0.0)
    out = hid @ params["w2_t"].astype(jnp.float32) + params["b2"]
    return out[:, :NUM_CLASSES]


if __name__ == "__main__":
    B, S = 2, 8            # batch, sequence length
    H_IN = 32              # stand-in for roberta hidden_size
    HIDDEN_DIM = 32        # LSTM hidden_dim (rnn_type='LSTM')
    VOCAB = 100

    key = jax.random.PRNGKey(0)
    k_param, k_ids = jax.random.split(key)
    params = prepare_params(init_raw_params(k_param, VOCAB, H_IN, HIDDEN_DIM))

    input_ids = jax.random.randint(k_ids, (B, S), 0, VOCAB, dtype=jnp.int32)
    attention_mask = jnp.ones((B, S), dtype=jnp.int32)

    # time_chunk=4 so the 8-step demo exercises the multi-chunk h/c carry path.
    logits = hybrid_model_forward(params, input_ids, attention_mask, time_chunk=4)
    jax.block_until_ready(logits)
    assert logits.shape == (B, NUM_CLASSES)

    ref = reference_forward(params, input_ids, attention_mask)
    assert jnp.allclose(logits, ref, atol=2e-2, rtol=2e-2)
    print("KERNEL_OK")
</pallas_src>

<mosaic_0001>
module attributes {stable_mosaic.version = 11 : i64} {
  func.func @fused_lstm_mlp_kernel(%arg0: i32, %arg1: memref<32x128xbf16, #tpu.memory_space<vmem>>, %arg2: memref<128x512xbf16, #tpu.memory_space<vmem>>, %arg3: memref<128x512xbf16, #tpu.memory_space<vmem>>, %arg4: memref<1x512xf32, #tpu.memory_space<vmem>>, %arg5: memref<128x256xbf16, #tpu.memory_space<vmem>>, %arg6: memref<1x256xf32, #tpu.memory_space<vmem>>, %arg7: memref<256x128xbf16, #tpu.memory_space<vmem>>, %arg8: memref<1x128xf32, #tpu.memory_space<vmem>>, %arg9: memref<8x128xf32, #tpu.memory_space<vmem>>, %arg10: memref<32x512xf32, #tpu.memory_space<vmem>>, %arg11: memref<8x128xf32, #tpu.memory_space<vmem>>, %arg12: memref<8x128xf32, #tpu.memory_space<vmem>>) attributes {dimension_semantics = [#tpu.dimension_semantics<arbitrary>], iteration_bounds = array<i64: 2>, scalar_prefetch = 0 : i64, scratch_operands = 3 : i64, tpu.core_type = #tpu.core_type<tc>, window_params = [{transform_indices = @transform_0, window_bounds = array<i64: 32, 128>}, {pipeline_mode = #tpu.pipeline_mode<synchronous>, transform_indices = @transform_1, window_bounds = array<i64: 128, 512>}, {pipeline_mode = #tpu.pipeline_mode<synchronous>, transform_indices = @transform_2, window_bounds = array<i64: 128, 512>}, {pipeline_mode = #tpu.pipeline_mode<synchronous>, transform_indices = @transform_3, window_bounds = array<i64: 1, 512>}, {pipeline_mode = #tpu.pipeline_mode<synchronous>, transform_indices = @transform_4, window_bounds = array<i64: 128, 256>}, {pipeline_mode = #tpu.pipeline_mode<synchronous>, transform_indices = @transform_5, window_bounds = array<i64: 1, 256>}, {pipeline_mode = #tpu.pipeline_mode<synchronous>, transform_indices = @transform_6, window_bounds = array<i64: 256, 128>}, {pipeline_mode = #tpu.pipeline_mode<synchronous>, transform_indices = @transform_7, window_bounds = array<i64: 1, 128>}, {pipeline_mode = #tpu.pipeline_mode<synchronous>, transform_indices = @transform_8, window_bounds = array<i64: 8, 128>}]} {
    %c0_i32 = arith.constant 0 : i32
    %0 = arith.cmpi eq, %arg0, %c0_i32 : i32
    %1 = arith.extui %0 : i1 to i32
    %c0_i32_0 = arith.constant 0 : i32
    %2 = arith.cmpi ne, %1, %c0_i32_0 : i32
    scf.if %2 {
      %cst_50 = arith.constant 0.000000e+00 : f32
      %149 = vector.broadcast %cst_50 : f32 to vector<8x128xf32>
      %c0_51 = arith.constant 0 : index
      %c0_52 = arith.constant 0 : index
      %150 = vector.load %arg11[%c0_51, %c0_52] : memref<8x128xf32, #tpu.memory_space<vmem>>, vector<8x128xf32>
      tpu.vector_store %arg11[%c0_51, %c0_52], %149 {strides = array<i32>} : memref<8x128xf32, #tpu.memory_space<vmem>>, vector<8x128xf32>,
      %cst_53 = arith.constant 0.000000e+00 : f32
      %151 = vector.broadcast %cst_53 : f32 to vector<8x128xf32>
      %c0_54 = arith.constant 0 : index
      %c0_55 = arith.constant 0 : index
      %152 = vector.load %arg12[%c0_54, %c0_55] : memref<8x128xf32, #tpu.memory_space<vmem>>, vector<8x128xf32>
      tpu.vector_store %arg12[%c0_54, %c0_55], %151 {strides = array<i32>} : memref<8x128xf32, #tpu.memory_space<vmem>>, vector<8x128xf32>,
    } else {
    }
    %c0 = arith.constant 0 : index
    %c0_1 = arith.constant 0 : index
    %3 = vector.load %arg1[%c0, %c0_1] : memref<32x128xbf16, #tpu.memory_space<vmem>>, vector<32x128xbf16>
    %c0_2 = arith.constant 0 : index
    %c0_3 = arith.constant 0 : index
    %4 = vector.load %arg2[%c0_2, %c0_3] : memref<128x512xbf16, #tpu.memory_space<vmem>>, vector<128x512xbf16>
    %cst = arith.constant dense<0.000000e+00> : vector<32x512xf32>
    %5 = tpu.matmul %3, %4, %cst {dimension_numbers = #tpu.dot_dimension_numbers<[1], [0], [0], [1], [0, 0, 1, 1], [], []>} : vector<32x128xbf16>, vector<128x512xbf16>, vector<32x512xf32> -> vector<32x512xf32>
    %c0_4 = arith.constant 0 : index
    %c0_5 = arith.constant 0 : index
    %6 = vector.load %arg4[%c0_4, %c0_5] : memref<1x512xf32, #tpu.memory_space<vmem>>, vector<1x512xf32>
    %7 = vector.broadcast %6 : vector<1x512xf32> to vector<32x512xf32>
    %8 = arith.addf %5, %7 : vector<32x512xf32>
    %c0_6 = arith.constant 0 : index
    %c0_7 = arith.constant 0 : index
    %9 = vector.load %arg10[%c0_6, %c0_7] : memref<32x512xf32, #tpu.memory_space<vmem>>, vector<32x512xf32>
    tpu.vector_store %arg10[%c0_6, %c0_7], %8 {strides = array<i32>} : memref<32x512xf32, #tpu.memory_space<vmem>>, vector<32x512xf32>,
    %c0_8 = arith.constant 0 : index
    %c0_9 = arith.constant 0 : index
    %10 = vector.load %arg11[%c0_8, %c0_9] : memref<8x128xf32, #tpu.memory_space<vmem>>, vector<8x128xf32>
    %c0_10 = arith.constant 0 : index
    %c0_11 = arith.constant 0 : index
    %11 = vector.load %arg12[%c0_10, %c0_11] : memref<8x128xf32, #tpu.memory_space<vmem>>, vector<8x128xf32>
    %c0_i32_12 = arith.constant 0 : i32
    %c8_i32 = arith.constant 8 : i32
    %12 = arith.muli %c0_i32_12, %c8_i32 : i32
    %13 = tpu.assume_multiple %12, 8 : i32
    %14 = arith.index_cast %13 : i32 to index
    %c0_13 = arith.constant 0 : index
    %15 = vector.load %arg10[%14, %c0_13] : memref<32x512xf32, #tpu.memory_space<vmem>>, vector<8x512xf32>
    %16 = arith.truncf %10 : vector<8x128xf32> to vector<8x128xbf16>
    %c0_14 = arith.constant 0 : index
    %c0_15 = arith.constant 0 : index
    %17 = vector.load %arg3[%c0_14, %c0_15] : memref<128x512xbf16, #tpu.memory_space<vmem>>, vector<128x512xbf16>
    %cst_16 = arith.constant dense<0.000000e+00> : vector<8x512xf32>
    %18 = tpu.matmul %16, %17, %cst_16 {dimension_numbers = #tpu.dot_dimension_numbers<[1], [0], [0], [1], [0, 0, 1, 1], [], []>} : vector<8x128xbf16>, vector<128x512xbf16>, vector<8x512xf32> -> vector<8x512xf32>
    %19 = arith.addf %15, %18 : vector<8x512xf32>
    %20 = vector.extract_strided_slice %19 {offsets = [0, 0], sizes = [8, 128], strides = [1, 1]} : vector<8x512xf32> to vector<8x128xf32>
    %21 = arith.negf %20 : vector<8x128xf32>
    %22 = math.exp %21 : vector<8x128xf32>
    %cst_17 = arith.constant 1.000000e+00 : f32
    %23 = vector.broadcast %cst_17 : f32 to vector<8x128xf32>
    %24 = arith.addf %23, %22 : vector<8x128xf32>
    %25 = arith.divf %23, %24 : vector<8x128xf32>
    %26 = vector.extract_strided_slice %19 {offsets = [0, 128], sizes = [8, 128], strides = [1, 1]} : vector<8x512xf32> to vector<8x128xf32>
    %27 = arith.negf %26 : vector<8x128xf32>
    %28 = math.exp %27 : vector<8x128xf32>
    %cst_18 = arith.constant 1.000000e+00 : f32
    %29 = vector.broadcast %cst_18 : f32 to vector<8x128xf32>
    %30 = arith.addf %29, %28 : vector<8x128xf32>
    %31 = arith.divf %29, %30 : vector<8x128xf32>
    %32 = vector.extract_strided_slice %19 {offsets = [0, 256], sizes = [8, 128], strides = [1, 1]} : vector<8x512xf32> to vector<8x128xf32>
    %33 = math.tanh %32 : vector<8x128xf32>
    %34 = vector.extract_strided_slice %19 {offsets = [0, 384], sizes = [8, 128], strides = [1, 1]} : vector<8x512xf32> to vector<8x128xf32>
    %35 = arith.negf %34 : vector<8x128xf32>
    %36 = math.exp %35 : vector<8x128xf32>
    %cst_19 = arith.constant 1.000000e+00 : f32
    %37 = vector.broadcast %cst_19 : f32 to vector<8x128xf32>
    %38 = arith.addf %37, %36 : vector<8x128xf32>
    %39 = arith.divf %37, %38 : vector<8x128xf32>
    %40 = arith.mulf %31, %11 : vector<8x128xf32>
    %41 = arith.mulf %25, %33 : vector<8x128xf32>
    %42 = arith.addf %40, %41 : vector<8x128xf32>
    %43 = math.tanh %42 : vector<8x128xf32>
    %44 = arith.mulf %39, %43 : vector<8x128xf32>
    %c1_i32 = arith.constant 1 : i32
    %c8_i32_20 = arith.constant 8 : i32
    %45 = arith.muli %c1_i32, %c8_i32_20 : i32
    %46 = tpu.assume_multiple %45, 8 : i32
    %47 = arith.index_cast %46 : i32 to index
    %c0_21 = arith.constant 0 : index
    %48 = vector.load %arg10[%47, %c0_21] : memref<32x512xf32, #tpu.memory_space<vmem>>, vector<8x512xf32>
    %49 = arith.truncf %44 : vector<8x128xf32> to vector<8x128xbf16>
    %c0_22 = arith.constant 0 : index
    %c0_23 = arith.constant 0 : index
    %50 = vector.load %arg3[%c0_22, %c0_23] : memref<128x512xbf16, #tpu.memory_space<vmem>>, vector<128x512xbf16>
    %cst_24 = arith.constant dense<0.000000e+00> : vector<8x512xf32>
    %51 = tpu.matmul %49, %50, %cst_24 {dimension_numbers = #tpu.dot_dimension_numbers<[1], [0], [0], [1], [0, 0, 1, 1], [], []>} : vector<8x128xbf16>, vector<128x512xbf16>, vector<8x512xf32> -> vector<8x512xf32>
    %52 = arith.addf %48, %51 : vector<8x512xf32>
    %53 = vector.extract_strided_slice %52 {offsets = [0, 0], sizes = [8, 128], strides = [1, 1]} : vector<8x512xf32> to vector<8x128xf32>
    %54 = arith.negf %53 : vector<8x128xf32>
    %55 = math.exp %54 : vector<8x128xf32>
    %cst_25 = arith.constant 1.000000e+00 : f32
    %56 = vector.broadcast %cst_25 : f32 to vector<8x128xf32>
    %57 = arith.addf %56, %55 : vector<8x128xf32>
    %58 = arith.divf %56, %57 : vector<8x128xf32>
    %59 = vector.extract_strided_slice %52 {offsets = [0, 128], sizes = [8, 128], strides = [1, 1]} : vector<8x512xf32> to vector<8x128xf32>
    %60 = arith.negf %59 : vector<8x128xf32>
    %61 = math.exp %60 : vector<8x128xf32>
    %cst_26 = arith.constant 1.000000e+00 : f32
    %62 = vector.broadcast %cst_26 : f32 to vector<8x128xf32>
    %63 = arith.addf %62, %61 : vector<8x128xf32>
    %64 = arith.divf %62, %63 : vector<8x128xf32>
    %65 = vector.extract_strided_slice %52 {offsets = [0, 256], sizes = [8, 128], strides = [1, 1]} : vector<8x512xf32> to vector<8x128xf32>
    %66 = math.tanh %65 : vector<8x128xf32>
    %67 = vector.extract_strided_slice %52 {offsets = [0, 384], sizes = [8, 128], strides = [1, 1]} : vector<8x512xf32> to vector<8x128xf32>
    %68 = arith.negf %67 : vector<8x128xf32>
    %69 = math.exp %68 : vector<8x128xf32>
    %cst_27 = arith.constant 1.000000e+00 : f32
    %70 = vector.broadcast %cst_27 : f32 to vector<8x128xf32>
    %71 = arith.addf %70, %69 : vector<8x128xf32>
    %72 = arith.divf %70, %71 : vector<8x128xf32>
    %73 = arith.mulf %64, %42 : vector<8x128xf32>
    %74 = arith.mulf %58, %66 : vector<8x128xf32>
    %75 = arith.addf %73, %74 : vector<8x128xf32>
    %76 = math.tanh %75 : vector<8x128xf32>
    %77 = arith.mulf %72, %76 : vector<8x128xf32>
    %c2_i32 = arith.constant 2 : i32
    %c8_i32_28 = arith.constant 8 : i32
    %78 = arith.muli %c2_i32, %c8_i32_28 : i32
    %79 = tpu.assume_multiple %78, 8 : i32
    %80 = arith.index_cast %79 : i32 to index
    %c0_29 = arith.constant 0 : index
    %81 = vector.load %arg10[%80, %c0_29] : memref<32x512xf32, #tpu.memory_space<vmem>>, vector<8x512xf32>
    %82 = arith.truncf %77 : vector<8x128xf32> to vector<8x128xbf16>
    %c0_30 = arith.constant 0 : index
    %c0_31 = arith.constant 0 : index
    %83 = vector.load %arg3[%c0_30, %c0_31] : memref<128x512xbf16, #tpu.memory_space<vmem>>, vector<128x512xbf16>
    %cst_32 = arith.constant dense<0.000000e+00> : vector<8x512xf32>
    %84 = tpu.matmul %82, %83, %cst_32 {dimension_numbers = #tpu.dot_dimension_numbers<[1], [0], [0], [1], [0, 0, 1, 1], [], []>} : vector<8x128xbf16>, vector<128x512xbf16>, vector<8x512xf32> -> vector<8x512xf32>
    %85 = arith.addf %81, %84 : vector<8x512xf32>
    %86 = vector.extract_strided_slice %85 {offsets = [0, 0], sizes = [8, 128], strides = [1, 1]} : vector<8x512xf32> to vector<8x128xf32>
    %87 = arith.negf %86 : vector<8x128xf32>
    %88 = math.exp %87 : vector<8x128xf32>
    %cst_33 = arith.constant 1.000000e+00 : f32
    %89 = vector.broadcast %cst_33 : f32 to vector<8x128xf32>
    %90 = arith.addf %89, %88 : vector<8x128xf32>
    %91 = arith.divf %89, %90 : vector<8x128xf32>
    %92 = vector.extract_strided_slice %85 {offsets = [0, 128], sizes = [8, 128], strides = [1, 1]} : vector<8x512xf32> to vector<8x128xf32>
    %93 = arith.negf %92 : vector<8x128xf32>
    %94 = math.exp %93 : vector<8x128xf32>
    %cst_34 = arith.constant 1.000000e+00 : f32
    %95 = vector.broadcast %cst_34 : f32 to vector<8x128xf32>
    %96 = arith.addf %95, %94 : vector<8x128xf32>
    %97 = arith.divf %95, %96 : vector<8x128xf32>
    %98 = vector.extract_strided_slice %85 {offsets = [0, 256], sizes = [8, 128], strides = [1, 1]} : vector<8x512xf32> to vector<8x128xf32>
    %99 = math.tanh %98 : vector<8x128xf32>
    %100 = vector.extract_strided_slice %85 {offsets = [0, 384], sizes = [8, 128], strides = [1, 1]} : vector<8x512xf32> to vector<8x128xf32>
    %101 = arith.negf %100 : vector<8x128xf32>
    %102 = math.exp %101 : vector<8x128xf32>
    %cst_35 = arith.constant 1.000000e+00 : f32
    %103 = vector.broadcast %cst_35 : f32 to vector<8x128xf32>
    %104 = arith.addf %103, %102 : vector<8x128xf32>
    %105 = arith.divf %103, %104 : vector<8x128xf32>
    %106 = arith.mulf %97, %75 : vector<8x128xf32>
    %107 = arith.mulf %91, %99 : vector<8x128xf32>
    %108 = arith.addf %106, %107 : vector<8x128xf32>
    %109 = math.tanh %108 : vector<8x128xf32>
    %110 = arith.mulf %105, %109 : vector<8x128xf32>
    %c3_i32 = arith.constant 3 : i32
    %c8_i32_36 = arith.constant 8 : i32
    %111 = arith.muli %c3_i32, %c8_i32_36 : i32
    %112 = tpu.assume_multiple %111, 8 : i32
    %113 = arith.index_cast %112 : i32 to index
    %c0_37 = arith.constant 0 : index
    %114 = vector.load %arg10[%113, %c0_37] : memref<32x512xf32, #tpu.memory_space<vmem>>, vector<8x512xf32>
    %115 = arith.truncf %110 : vector<8x128xf32> to vector<8x128xbf16>
    %c0_38 = arith.constant 0 : index
    %c0_39 = arith.constant 0 : index
    %116 = vector.load %arg3[%c0_38, %c0_39] : memref<128x512xbf16, #tpu.memory_space<vmem>>, vector<128x512xbf16>
    %cst_40 = arith.constant dense<0.000000e+00> : vector<8x512xf32>
    %117 = tpu.matmul %115, %116, %cst_40 {dimension_numbers = #tpu.dot_dimension_numbers<[1], [0], [0], [1], [0, 0, 1, 1], [], []>} : vector<8x128xbf16>, vector<128x512xbf16>, vector<8x512xf32> -> vector<8x512xf32>
    %118 = arith.addf %114, %117 : vector<8x512xf32>
    %119 = vector.extract_strided_slice %118 {offsets = [0, 0], sizes = [8, 128], strides = [1, 1]} : vector<8x512xf32> to vector<8x128xf32>
    %120 = arith.negf %119 : vector<8x128xf32>
    %121 = math.exp %120 : vector<8x128xf32>
    %cst_41 = arith.constant 1.000000e+00 : f32
    %122 = vector.broadcast %cst_41 : f32 to vector<8x128xf32>
    %123 = arith.addf %122, %121 : vector<8x128xf32>
    %124 = arith.divf %122, %123 : vector<8x128xf32>
    %125 = vector.extract_strided_slice %118 {offsets = [0, 128], sizes = [8, 128], strides = [1, 1]} : vector<8x512xf32> to vector<8x128xf32>
    %126 = arith.negf %125 : vector<8x128xf32>
    %127 = math.exp %126 : vector<8x128xf32>
    %cst_42 = arith.constant 1.000000e+00 : f32
    %128 = vector.broadcast %cst_42 : f32 to vector<8x128xf32>
    %129 = arith.addf %128, %127 : vector<8x128xf32>
    %130 = arith.divf %128, %129 : vector<8x128xf32>
    %131 = vector.extract_strided_slice %118 {offsets = [0, 256], sizes = [8, 128], strides = [1, 1]} : vector<8x512xf32> to vector<8x128xf32>
    %132 = math.tanh %131 : vector<8x128xf32>
    %133 = vector.extract_strided_slice %118 {offsets = [0, 384], sizes = [8, 128], strides = [1, 1]} : vector<8x512xf32> to vector<8x128xf32>
    %134 = arith.negf %133 : vector<8x128xf32>
    %135 = math.exp %134 : vector<8x128xf32>
    %cst_43 = arith.constant 1.000000e+00 : f32
    %136 = vector.broadcast %cst_43 : f32 to vector<8x128xf32>
    %137 = arith.addf %136, %135 : vector<8x128xf32>
    %138 = arith.divf %136, %137 : vector<8x128xf32>
    %139 = arith.mulf %130, %108 : vector<8x128xf32>
    %140 = arith.mulf %124, %132 : vector<8x128xf32>
    %141 = arith.addf %139, %140 : vector<8x128xf32>
    %142 = math.tanh %141 : vector<8x128xf32>
    %143 = arith.mulf %138, %142 : vector<8x128xf32>
    %c4_i32 = arith.constant 4 : i32
    %c0_44 = arith.constant 0 : index
    %c0_45 = arith.constant 0 : index
    %144 = vector.load %arg11[%c0_44, %c0_45] : memref<8x128xf32, #tpu.memory_space<vmem>>, vector<8x128xf32>
    tpu.vector_store %arg11[%c0_44, %c0_45], %143 {strides = array<i32>} : memref<8x128xf32, #tpu.memory_space<vmem>>, vector<8x128xf32>,
    %c0_46 = arith.constant 0 : index
    %c0_47 = arith.constant 0 : index
    %145 = vector.load %arg12[%c0_46, %c0_47] : memref<8x128xf32, #tpu.memory_space<vmem>>, vector<8x128xf32>
    tpu.vector_store %arg12[%c0_46, %c0_47], %141 {strides = array<i32>} : memref<8x128xf32, #tpu.memory_space<vmem>>, vector<8x128xf32>,
    %c1_i32_48 = arith.constant 1 : i32
    %146 = arith.cmpi eq, %arg0, %c1_i32_48 : i32
    %147 = arith.extui %146 : i1 to i32
    %c0_i32_49 = arith.constant 0 : i32
    %148 = arith.cmpi ne, %147, %c0_i32_49 : i32
    scf.if %148 {
      %149 = arith.truncf %143 : vector<8x128xf32> to vector<8x128xbf16>
      %c0_50 = arith.constant 0 : index
      %c0_51 = arith.constant 0 : index
      %150 = vector.load %arg5[%c0_50, %c0_51] : memref<128x256xbf16, #tpu.memory_space<vmem>>, vector<128x256xbf16>
      %cst_52 = arith.constant dense<0.000000e+00> : vector<8x256xf32>
      %151 = tpu.matmul %149, %150, %cst_52 {dimension_numbers = #tpu.dot_dimension_numbers<[1], [0], [0], [1], [0, 0, 1, 1], [], []>} : vector<8x128xbf16>, vector<128x256xbf16>, vector<8x256xf32> -> vector<8x256xf32>
      %c0_53 = arith.constant 0 : index
      %c0_54 = arith.constant 0 : index
      %152 = vector.load %arg6[%c0_53, %c0_54] : memref<1x256xf32, #tpu.memory_space<vmem>>, vector<1x256xf32>
      %153 = vector.broadcast %152 : vector<1x256xf32> to vector<8x256xf32>
      %154 = arith.addf %151, %153 : vector<8x256xf32>
      %cst_55 = arith.constant 0.000000e+00 : f32
      %155 = vector.broadcast %cst_55 : f32 to vector<8x256xf32>
      %156 = arith.maximumf %154, %155 : vector<8x256xf32>
      %157 = arith.truncf %156 : vector<8x256xf32> to vector<8x256xbf16>
      %c0_56 = arith.constant 0 : index
      %c0_57 = arith.constant 0 : index
      %158 = vector.load %arg7[%c0_56, %c0_57] : memref<256x128xbf16, #tpu.memory_space<vmem>>, vector<256x128xbf16>
      %cst_58 = arith.constant dense<0.000000e+00> : vector<8x128xf32>
      %159 = tpu.matmul %157, %158, %cst_58 {dimension_numbers = #tpu.dot_dimension_numbers<[1], [0], [0], [1], [0, 0, 1, 1], [], []>} : vector<8x256xbf16>, vector<256x128xbf16>, vector<8x128xf32> -> vector<8x128xf32>
      %c0_59 = arith.constant 0 : index
      %c0_60 = arith.constant 0 : index
      %160 = vector.load %arg8[%c0_59, %c0_60] : memref<1x128xf32, #tpu.memory_space<vmem>>, vector<1x128xf32>
      %161 = vector.broadcast %160 : vector<1x128xf32> to vector<8x128xf32>
      %162 = arith.addf %159, %161 : vector<8x128xf32>
      %c0_61 = arith.constant 0 : index
      %c0_62 = arith.constant 0 : index
      %163 = vector.load %arg9[%c0_61, %c0_62] : memref<8x128xf32, #tpu.memory_space<vmem>>, vector<8x128xf32>
      tpu.vector_store %arg9[%c0_61, %c0_62], %162 {strides = array<i32>} : memref<8x128xf32, #tpu.memory_space<vmem>>, vector<8x128xf32>,
    } else {
    }
    return
  }
  func.func @transform_0(%arg0: i32) -> (i32, i32) {
    %c0_i32 = arith.constant 0 : i32
    %c0_i32_0 = arith.constant 0 : i32
    return %arg0, %c0_i32 : i32, i32
  }
  func.func @transform_1(%arg0: i32) -> (i32, i32) {
    %c0_i32 = arith.constant 0 : i32
    %c0_i32_0 = arith.constant 0 : i32
    %c0_i32_1 = arith.constant 0 : i32
    return %c0_i32, %c0_i32_0 : i32, i32
  }
  func.func @transform_2(%arg0: i32) -> (i32, i32) {
    %c0_i32 = arith.constant 0 : i32
    %c0_i32_0 = arith.constant 0 : i32
    %c0_i32_1 = arith.constant 0 : i32
    return %c0_i32, %c0_i32_0 : i32, i32
  }
  func.func @transform_3(%arg0: i32) -> (i32, i32) {
    %c0_i32 = arith.constant 0 : i32
    %c0_i32_0 = arith.constant 0 : i32
    %c0_i32_1 = arith.constant 0 : i32
    return %c0_i32, %c0_i32_0 : i32, i32
  }
  func.func @transform_4(%arg0: i32) -> (i32, i32) {
    %c0_i32 = arith.constant 0 : i32
    %c0_i32_0 = arith.constant 0 : i32
    %c0_i32_1 = arith.constant 0 : i32
    return %c0_i32, %c0_i32_0 : i32, i32
  }
  func.func @transform_5(%arg0: i32) -> (i32, i32) {
    %c0_i32 = arith.constant 0 : i32
    %c0_i32_0 = arith.constant 0 : i32
    %c0_i32_1 = arith.constant 0 : i32
    return %c0_i32, %c0_i32_0 : i32, i32
  }
  func.func @transform_6(%arg0: i32) -> (i32, i32) {
    %c0_i32 = arith.constant 0 : i32
    %c0_i32_0 = arith.constant 0 : i32
    %c0_i32_1 = arith.constant 0 : i32
    return %c0_i32, %c0_i32_0 : i32, i32
  }
  func.func @transform_7(%arg0: i32) -> (i32, i32) {
    %c0_i32 = arith.constant 0 : i32
    %c0_i32_0 = arith.constant 0 : i32
    %c0_i32_1 = arith.constant 0 : i32
    return %c0_i32, %c0_i32_0 : i32, i32
  }
  func.func @transform_8(%arg0: i32) -> (i32, i32) {
    %c0_i32 = arith.constant 0 : i32
    %c0_i32_0 = arith.constant 0 : i32
    %c0_i32_1 = arith.constant 0 : i32
    return %c0_i32, %c0_i32_0 : i32, i32
  }
}

</mosaic_0001>

<bundles_post_ra>
// kernel: hybrid_model_forward.1
= control target key start
LH: loop header
LB: loop body
LE: loop exit
PB: predicated region body
PF: predicated region fallthrough
CT: control target
= control target key end

     0   :  { %13 = vsyncpa [#allocation6], 0  ;;  %s3034_s0 = inlined_call_operand.vmem [shape: bf16[64,128], index: 0, kind: input, shape index: {}]   ;;  %s3035_s1 = inlined_call_operand.vmem [shape: bf16[128,512], index: 1, kind: input, shape index: {}]   ;;  %s3036_s2 = inlined_call_operand.hbm [shape: bf16[128,512], index: 2, kind: input, shape index: {}]   ;;  %s3037_s3 = inlined_call_operand.vmem [shape: f32[1,512], index: 3, kind: input, shape index: {}]   ;;  %s3038_s4 = inlined_call_operand.vmem [shape: bf16[128,256], index: 4, kind: input, shape index: {}]   ;;  %s3039_s5 = inlined_call_operand.vmem [shape: f32[1,256], index: 5, kind: input, shape index: {}]   ;;  %s3040_s6 = inlined_call_operand.hbm [shape: bf16[256,128], index: 6, kind: input, shape index: {}]   ;;  %s3041_s7 = inlined_call_operand.vmem [shape: f32[1,128], index: 7, kind: input, shape index: {}]   ;;  %s3042_s8 = inlined_call_operand.vmem [shape: f32[8,128], index: 8, kind: output, shape index: {}]  }
   0x1   :  { %14 = vsyncpa [#allocation8], 0  ;;  %s2439_s27 = smov 0  }
   0x2 LB: > { %s233_s30 = sshll.u32 %s3036_s2, 4  ;;  %s2448_s9 = sadd.s32 4294967295, %s2385_s27   ;;  %s2385_s27 = sphi %s2439_s27, %s20_s27   ;;  %s234_s30 = int_to_ptr.hbm [resolvable:$true] %s233_s30 }
   0x3   : > { %p1697_p0 = scmp.ge.s32.totalorder %s2385_s27, 1  ;;  %p219_p1 = scmp.lt.s32.totalorder %s2385_s27, 3 }
   0x4   : > { %p1698_p2 = scmp.ne.s32.totalorder %s2448_s9, 0  ;;  %p2227_p3 = scmp.eq.s32.totalorder %s2448_s9, 0 }
   0x5   : > { %p2454_p4 = pnand %p1697_p0, %p219_p1  ;;  %s2387_s11 = smov [#allocation5]  }
   0x6   : > { %s235_s12 = sshll.u32 %s2387_s11, 4  ;;  %s256_s15 = sshll.u32 %s3040_s6, 4  ;;  %s236_s12 = int_to_ptr.vmem [resolvable:$true] %s235_s12  ;;  %s257_s15 = int_to_ptr.hbm [resolvable:$true] %s256_s15 }
   0x7   : > { %p2220_p5 = pneg %p2454_p4  ;;  %s2388_s16 = smov [#allocation7]  }
   0x8   : > { %s258_s17 = sshll.u32 %s2388_s16, 4  ;;  %s2389_s18 = smov 256   ;;  %s259_s17 = int_to_ptr.vmem [resolvable:$true] %s258_s17 }
   0x9   : > { %p2221_p6 = pnand %p2227_p3, %p2220_p5  ;;  %s2390_s19 = smov 16  }
   0xa   : > { %s2391_s20 = smov 64   ;;  %s2392_s21 = smov 4  }
   0xb   : > { %2223 = dma.hbm_to_vmem [thread:$0]  (!%p2221_p6), %s234_s30, 4096, %s236_s12, [#allocation6], %s2389_s18, %s2389_s18, %s2390_s19  }
   0xc   : > { %2226 = dma.hbm_to_vmem [thread:$0]  (!%p2221_p6), %s257_s15, 2048, %s259_s17, [#allocation8], %s2391_s20, %s2391_s20, %s2392_s21  }
   0xd   : > { %286 = sbr.rel (%p2454_p4) target bundleno = 1091 (0x443), region = 52 }
  0x12   : > { %2376 = dma.done.wait (%p2227_p3), [#allocation6], 4096  }
  0x13   : > { %2378 = vsyncadd (%p2227_p3), [#allocation6], 4294963200 }
  0x14   : > { %2380 = dma.done.wait (%p2227_p3), [#allocation8], 2048  }
  0x15   : > { %2382 = vsyncadd (%p2227_p3), [#allocation8], 4294965248  ;;  %s1704_s22 = sshll.u32 %s2448_s9, 2 }
  0x16   : > { %p322_p7 = scmp.lt.s32.totalorder %s1704_s22, 7  ;;  %330 = sbr.rel (%p1698_p2) target bundleno = 30 (0x1e), region = 64 }
  0x18   : > { %s3057_s22 = smov (!%p322_p7, %s1704_s22), 7 }
  0x19   : > { %s1705_s23 = sshll.u32 %s3057_s22, 2 }
  0x1a   : > { %s2479_s26 = scalar_lea.vmem %s3034_s0, %s1705_s23 }
  0x1b   : > { %v2393_v0 = vmov 0.0  }
  0x1c   : > { %331 = vst [vmem:[#allocation3] sm:$0xff] %v2393_v0 }
  0x1d   : > { %332 = vst [vmem:[#allocation4] sm:$0xff] %v2393_v0 }
  0x1e PF: > { %v1829_v1 = vld [vmem:[%s3035_s1 + $0xe0] sm:$0xf]  ;;  %v2146_v2 = vld [vmem:[%s3035_s1 + $0xec] sm:$0xf0]  ;;  %v2144_v3 = vld [vmem:[%s3035_s1 + $0xe4] sm:$0xf] }
  0x1f   : > { %v1830_v4 = vor.u32 %v2146_v2, %v1829_v1  ;;  %v1831_v5 = vld [vmem:[%s3035_s1 + $0xf0] sm:$0xf0]  ;;  %v1837_v6 = vld [vmem:[%s3035_s1 + $0xe8] sm:$0xf]  ;;  %v2147_v7 = vld [vmem:[%s3035_s1 + $0xf4] sm:$0xf0] }
  0x20   : > { %v1834_v8 = vor.u32 %v2144_v3, %v1831_v5  ;;  %v1838_v9 = vor.u32 %v2147_v7, %v1837_v6  ;;  %v2145_v10 = vld [vmem:[%s3035_s1 + $0xec] sm:$0xf]  ;;  %v1839_v11 = vld [vmem:[%s3035_s1 + $0xf8] sm:$0xf0]  ;;  %v1813_v12 = vld [vmem:[%s3035_s1 + $0xc0] sm:$0xf] }
  0x21   : > { %551 = vmatpush.bf16.msra.mxu0 %v1830_v4  ;;  %v1842_v13 = vor.u32 %v2145_v10, %v1839_v11  ;;  %v2142_v14 = vld [vmem:[%s3035_s1 + $0xcc] sm:$0xf0]  ;;  %v2140_v15 = vld [vmem:[%s3035_s1 + $0xc4] sm:$0xf]  ;;  %v1815_v16 = vld [vmem:[%s3035_s1 + $0xd0] sm:$0xf0] }
  0x22   : > { %570 = vmatpush.bf16.msra.mxu1 %v1834_v8  ;;  %589 = vmatpush.bf16.msra.mxu2 %v1838_v9  ;;  %v1814_v17 = vor.u32 %v2142_v14, %v1813_v12  ;;  %v1818_v18 = vor.u32 %v2140_v15, %v1815_v16  ;;  %v1821_v19 = vld [vmem:[%s3035_s1 + $0xc8] sm:$0xf]  ;;  %v2143_v20 = vld [vmem:[%s3035_s1 + $0xd4] sm:$0xf0]  ;;  %v2141_v21 = vld [vmem:[%s3035_s1 + $0xcc] sm:$0xf] }
  0x23   : > { %608 = vmatpush.bf16.msra.mxu3 %v1842_v13  ;;  %v1822_v22 = vor.u32 %v2143_v20, %v1821_v19  ;;  %v1823_v23 = vld [vmem:[%s3035_s1 + $0xd8] sm:$0xf0]  ;;  %v1797_v24 = vld [vmem:[%s3035_s1 + $0xa0] sm:$0xf]  ;;  %v2138_v25 = vld [vmem:[%s3035_s1 + $0xac] sm:$0xf0] }
  0x24   : > { %v1826_v26 = vor.u32 %v2141_v21, %v1823_v23  ;;  %v2136_v27 = vld [vmem:[%s3035_s1 + $0xa4] sm:$0xf]  ;;  %v1799_v28 = vld [vmem:[%s3035_s1 + $0xb0] sm:$0xf0]  ;;  %v1805_v29 = vld [vmem:[%s3035_s1 + $0xa8] sm:$0xf]  ;;  %v1798_v30 = vor.u32 %v2138_v25, %v1797_v24 }
  0x25   : > { %552 = vmatpush.bf16.msra.mxu0 %v1814_v17  ;;  %v2139_v31 = vld [vmem:[%s3035_s1 + $0xb4] sm:$0xf0]  ;;  %v2137_v32 = vld [vmem:[%s3035_s1 + $0xac] sm:$0xf]  ;;  %v1807_v33 = vld [vmem:[%s3035_s1 + $0xb8] sm:$0xf0]  ;;  %v1802_v34 = vor.u32 %v2136_v27, %v1799_v28 }
  0x26   : > { %571 = vmatpush.bf16.msra.mxu1 %v1818_v18  ;;  %590 = vmatpush.bf16.msra.mxu2 %v1822_v22  ;;  %v1806_v35 = vor.u32 %v2139_v31, %v1805_v29  ;;  %v1781_v36 = vld [vmem:[%s3035_s1 + $0x80] sm:$0xf]  ;;  %v2134_v37 = vld [vmem:[%s3035_s1 + $0x8c] sm:$0xf0]  ;;  %v2132_v38 = vld [vmem:[%s3035_s1 + $0x84] sm:$0xf]  ;;  %v1810_v39 = vor.u32 %v2137_v32, %v1807_v33 }
  0x27   : > { %609 = vmatpush.bf16.msra.mxu3 %v1826_v26  ;;  %v1783_v40 = vld [vmem:[%s3035_s1 + $0x90] sm:$0xf0]  ;;  %v1789_v41 = vld [vmem:[%s3035_s1 + $0x88] sm:$0xf]  ;;  %v2135_v42 = vld [vmem:[%s3035_s1 + $0x94] sm:$0xf0]  ;;  %v1782_v45 = vor.u32 %v2134_v37, %v1781_v36 }
  0x28   : > { %v2133_v43 = vld [vmem:[%s3035_s1 + $0x8c] sm:$0xf]  ;;  %v1791_v44 = vld [vmem:[%s3035_s1 + $0x98] sm:$0xf0]  ;;  %v1786_v46 = vor.u32 %v2132_v38, %v1783_v40  ;;  %v1790_v47 = vor.u32 %v2135_v42, %v1789_v41  ;;  %v1765_v48 = vld [vmem:[%s3035_s1 + $0x60] sm:$0xf] }
  0x29   : > { %553 = vmatpush.bf16.msra.mxu0 %v1798_v30  ;;  %v2130_v49 = vld [vmem:[%s3035_s1 + $0x6c] sm:$0xf0]  ;;  %v2128_v50 = vld [vmem:[%s3035_s1 + $0x64] sm:$0xf]  ;;  %v1794_v51 = vor.u32 %v2133_v43, %v1791_v44  ;;  %v1767_v52 = vld [vmem:[%s3035_s1 + $0x70] sm:$0xf0] }
  0x2a   : > { %572 = vmatpush.bf16.msra.mxu1 %v1802_v34  ;;  %591 = vmatpush.bf16.msra.mxu2 %v1806_v35  ;;  %v1773_v53 = vld [vmem:[%s3035_s1 + $0x68] sm:$0xf]  ;;  %v2131_v54 = vld [vmem:[%s3035_s1 + $0x74] sm:$0xf0]  ;;  %v2129_v55 = vld [vmem:[%s3035_s1 + $0x6c] sm:$0xf]  ;;  %v1766_v57 = vor.u32 %v2130_v49, %v1765_v48  ;;  %v1770_v58 = vor.u32 %v2128_v50, %v1767_v52 }
  0x2b   : > { %610 = vmatpush.bf16.msra.mxu3 %v1810_v39  ;;  %v1775_v56 = vld [vmem:[%s3035_s1 + $0x78] sm:$0xf0]  ;;  %v1774_v59 = vor.u32 %v2131_v54, %v1773_v53  ;;  %v1749_v60 = vld [vmem:[%s3035_s1 + $0x40] sm:$0xf]  ;;  %v2126_v61 = vld [vmem:[%s3035_s1 + $0x4c] sm:$0xf0] }
  0x2c   : > { %v2124_v62 = vld [vmem:[%s3035_s1 + $0x44] sm:$0xf]  ;;  %v1778_v63 = vor.u32 %v2129_v55, %v1775_v56  ;;  %v1751_v0 = vld [vmem:[%s3035_s1 + $0x50] sm:$0xf0]  ;;  %v1757_v1 = vld [vmem:[%s3035_s1 + $0x48] sm:$0xf]  ;;  %v1750_v5 = vor.u32 %v2126_v61, %v1749_v60 }
  0x2d   : > { %554 = vmatpush.bf16.msra.mxu0 %v1782_v45  ;;  %v2127_v2 = vld [vmem:[%s3035_s1 + $0x54] sm:$0xf0]  ;;  %v2125_v3 = vld [vmem:[%s3035_s1 + $0x4c] sm:$0xf]  ;;  %v1759_v4 = vld [vmem:[%s3035_s1 + $0x58] sm:$0xf0]  ;;  %v1754_v6 = vor.u32 %v2124_v62, %v1751_v0 }
  0x2e   : > { %573 = vmatpush.bf16.msra.mxu1 %v1786_v46  ;;  %592 = vmatpush.bf16.msra.mxu2 %v1790_v47  ;;  %v1758_v7 = vor.u32 %v2127_v2, %v1757_v1  ;;  %v1733_v8 = vld [vmem:[%s3035_s1 + $0x20] sm:$0xf]  ;;  %v2122_v9 = vld [vmem:[%s3035_s1 + $0x2c] sm:$0xf0]  ;;  %v2120_v10 = vld [vmem:[%s3035_s1 + $0x24] sm:$0xf]  ;;  %v1762_v11 = vor.u32 %v2125_v3, %v1759_v4 }
  0x2f   : > { %611 = vmatpush.bf16.msra.mxu3 %v1794_v51  ;;  %v1735_v12 = vld [vmem:[%s3035_s1 + $0x30] sm:$0xf0]  ;;  %v1741_v13 = vld [vmem:[%s3035_s1 + $0x28] sm:$0xf]  ;;  %v2123_v14 = vld [vmem:[%s3035_s1 + $0x34] sm:$0xf0]  ;;  %v1734_v17 = vor.u32 %v2122_v9, %v1733_v8 }
  0x30   : > { %v2121_v15 = vld [vmem:[%s3035_s1 + $0x2c] sm:$0xf]  ;;  %v1743_v16 = vld [vmem:[%s3035_s1 + $0x38] sm:$0xf0]  ;;  %v1717_v18 = vld [vmem:[%s3035_s1] sm:$0xf]  ;;  %v1738_v19 = vor.u32 %v2120_v10, %v1735_v12  ;;  %v1742_v20 = vor.u32 %v2123_v14, %v1741_v13 }
  0x31   : > { %555 = vmatpush.bf16.msra.mxu0 %v1766_v57  ;;  %v2118_v21 = vld [vmem:[%s3035_s1 + $0xc] sm:$0xf0]  ;;  %v2116_v22 = vld [vmem:[%s3035_s1 + $0x4] sm:$0xf]  ;;  %v1719_v23 = vld [vmem:[%s3035_s1 + $0x10] sm:$0xf0]  ;;  %v1746_v24 = vor.u32 %v2121_v15, %v1743_v16 }
  0x32   : > { %574 = vmatpush.bf16.msra.mxu1 %v1770_v58  ;;  %593 = vmatpush.bf16.msra.mxu2 %v1774_v59  ;;  %v1725_v25 = vld [vmem:[%s3035_s1 + $0x8] sm:$0xf]  ;;  %v2119_v26 = vld [vmem:[%s3035_s1 + $0x14] sm:$0xf0]  ;;  %v2117_v27 = vld [vmem:[%s3035_s1 + $0xc] sm:$0xf]  ;;  %v1718_v31 = vor.u32 %v2118_v21, %v1717_v18  ;;  %v1722_v34 = vor.u32 %v2116_v22, %v1719_v23 }
  0x33   : > { %612 = vmatpush.bf16.msra.mxu3 %v1778_v63  ;;  %v1727_v28 = vld [vmem:[%s3035_s1 + $0x18] sm:$0xf0]  ;;  %v1957_v29 = vld [vmem:[#allocation5 + $0xe0] sm:$0xf]  ;;  %v2178_v30 = vld [vmem:[#allocation5 + $0xec] sm:$0xf0]  ;;  %v1726_v35 = vor.u32 %v2119_v26, %v1725_v25 }
  0x34   : > { %v2176_v32 = vld [vmem:[#allocation5 + $0xe4] sm:$0xf]  ;;  %v1959_v33 = vld [vmem:[#allocation5 + $0xf0] sm:$0xf0]  ;;  %v1730_v37 = vor.u32 %v2117_v27, %v1727_v28  ;;  %v2676_v38 = vor.u32 %v2178_v30, %v1957_v29  ;;  %v1965_v39 = vld [vmem:[#allocation5 + $0xe8] sm:$0xf] }
  0x35   : > { %556 = vmatpush.bf16.msra.mxu0 %v1750_v5  ;;  %v2114_v36 = vld [vmem:[%s2479_s26] sm:$0xff]  ;;  %v2179_v40 = vld [vmem:[#allocation5 + $0xf4] sm:$0xf0]  ;;  %v2177_v41 = vld [vmem:[#allocation5 + $0xec] sm:$0xf]  ;;  %v2678_v42 = vor.u32 %v2176_v32, %v1959_v33  ;;  %p1983_p8 = scmp.ne.s32.totalorder %s2448_s9, 1 }
  0x36   : > { %575 = vmatpush.bf16.msra.mxu1 %v1754_v6  ;;  %594 = vmatpush.bf16.msra.mxu2 %v1758_v7  ;;  %v1967_v43 = vld [vmem:[#allocation5 + $0xf8] sm:$0xf0]  ;;  %v1941_v44 = vld [vmem:[#allocation5 + $0xc0] sm:$0xf]  ;;  %v2174_v45 = vld [vmem:[#allocation5 + $0xcc] sm:$0xf0]  ;;  %v2680_v48 = vor.u32 %v2179_v40, %v1965_v39 }
  0x37   : > { %613 = vmatpush.bf16.msra.mxu3 %v1762_v11  ;;  %v2172_v46 = vld [vmem:[#allocation5 + $0xc4] sm:$0xf]  ;;  %v1943_v47 = vld [vmem:[#allocation5 + $0xd0] sm:$0xf0]  ;;  %v2683_v49 = vor.u32 %v2177_v41, %v1967_v43  ;;  %v2685_v50 = vor.u32 %v2174_v45, %v1941_v44  ;;  %v1949_v51 = vld [vmem:[#allocation5 + $0xc8] sm:$0xf] }
  0x38   : > { %v2175_v52 = vld [vmem:[#allocation5 + $0xd4] sm:$0xf0]  ;;  %v2173_v53 = vld [vmem:[#allocation5 + $0xcc] sm:$0xf]  ;;  %v2688_v54 = vor.u32 %v2172_v46, %v1943_v47  ;;  %v1951_v55 = vld [vmem:[#allocation5 + $0xd8] sm:$0xf0] }
  0x39   : > { %557 = vmatpush.bf16.msra.mxu0 %v1734_v17  ;;  %v1925_v56 = vld [vmem:[#allocation5 + $0xa0] sm:$0xf]  ;;  %v2170_v57 = vld [vmem:[#allocation5 + $0xac] sm:$0xf0]  ;;  %v2168_v58 = vld [vmem:[#allocation5 + $0xa4] sm:$0xf]  ;;  %v2691_v60 = vor.u32 %v2175_v52, %v1949_v51  ;;  %v2695_v61 = vor.u32 %v2173_v53, %v1951_v55 }
  0x3a   : > { %576 = vmatpush.bf16.msra.mxu1 %v1738_v19  ;;  %595 = vmatpush.bf16.msra.mxu2 %v1742_v20  ;;  %v1927_v59 = vld [vmem:[#allocation5 + $0xb0] sm:$0xf0]  ;;  %v2697_v62 = vor.u32 %v2170_v57, %v1925_v56  ;;  %v1933_v63 = vld [vmem:[#allocation5 + $0xa8] sm:$0xf]  ;;  %v2171_v0 = vld [vmem:[#allocation5 + $0xb4] sm:$0xf0] }
  0x3b   : > { %614 = vmatpush.bf16.msra.mxu3 %v1746_v24  ;;  %v2169_v1 = vld [vmem:[#allocation5 + $0xac] sm:$0xf]  ;;  %v2700_v2 = vor.u32 %v2168_v58, %v1927_v59  ;;  %v1935_v3 = vld [vmem:[#allocation5 + $0xb8] sm:$0xf0]  ;;  %v1909_v4 = vld [vmem:[#allocation5 + $0x80] sm:$0xf]  ;;  %v2703_v8 = vor.u32 %v2171_v0, %v1933_v63 }
  0x3c   : > { %v2166_v5 = vld [vmem:[#allocation5 + $0x8c] sm:$0xf0]  ;;  %v2164_v6 = vld [vmem:[#allocation5 + $0x84] sm:$0xf]  ;;  %v1911_v7 = vld [vmem:[#allocation5 + $0x90] sm:$0xf0]  ;;  %v2707_v9 = vor.u32 %v2169_v1, %v1935_v3 }
  0x3d   : > { %558 = vmatpush.bf16.msra.mxu0 %v1718_v31  ;;  %v2709_v10 = vor.u32 %v2166_v5, %v1909_v4  ;;  %v1917_v11 = vld [vmem:[#allocation5 + $0x88] sm:$0xf]  ;;  %v2167_v12 = vld [vmem:[#allocation5 + $0x94] sm:$0xf0]  ;;  %v2165_v13 = vld [vmem:[#allocation5 + $0x8c] sm:$0xf]  ;;  %v2712_v14 = vor.u32 %v2164_v6, %v1911_v7 }
  0x3e   : > { %577 = vmatpush.bf16.msra.mxu1 %v1722_v34  ;;  %596 = vmatpush.bf16.msra.mxu2 %v1726_v35  ;;  %v1919_v15 = vld [vmem:[#allocation5 + $0x98] sm:$0xf0]  ;;  %v1893_v16 = vld [vmem:[#allocation5 + $0x60] sm:$0xf]  ;;  %v2162_v17 = vld [vmem:[#allocation5 + $0x6c] sm:$0xf0]  ;;  %v2715_v20 = vor.u32 %v2167_v12, %v1917_v11 }
  0x3f   : > { %615 = vmatpush.bf16.msra.mxu3 %v1730_v37  ;;  %v2160_v18 = vld [vmem:[#allocation5 + $0x64] sm:$0xf]  ;;  %v1895_v19 = vld [vmem:[#allocation5 + $0x70] sm:$0xf0]  ;;  %v2115_v21 = vld [vmem:[%s2479_s26 + $0x8] sm:$0xff]  ;;  %v2720_v22 = vor.u32 %v2165_v13, %v1919_v15  ;;  %v2722_v23 = vor.u32 %v2162_v17, %v1893_v16 }
  0x40   : > { %559 = vmatmul.bf16.vlgmr.msra.gmra.mxu0 %v2114_v36  ;;  %v1901_v24 = vld [vmem:[#allocation5 + $0x68] sm:$0xf]  ;;  %v2163_v25 = vld [vmem:[#allocation5 + $0x74] sm:$0xf0]  ;;  %v2161_v26 = vld [vmem:[#allocation5 + $0x6c] sm:$0xf]  ;;  %v2725_v27 = vor.u32 %v2160_v18, %v1895_v19 }
  0x41   : > { %845 = vmatpush.bf16.msrb.mxu0 %v2676_v38  ;;  %578 = vmatmul.bf16.vlgmr.msra.gmra.mxu1 %v2114_v36  ;;  %v1903_v28 = vld [vmem:[#allocation5 + $0x78] sm:$0xf0]  ;;  %v1877_v29 = vld [vmem:[#allocation5 + $0x40] sm:$0xf]  ;;  %v2158_v30 = vld [vmem:[#allocation5 + $0x4c] sm:$0xf0]  ;;  %v2728_v33 = vor.u32 %v2163_v25, %v1901_v24 }
  0x42   : > { %858 = vmatpush.bf16.msrb.mxu1 %v2678_v42  ;;  %597 = vmatmul.bf16.vlgmr.msra.gmra.mxu2 %v2114_v36  ;;  %v2156_v31 = vld [vmem:[#allocation5 + $0x44] sm:$0xf]  ;;  %v1879_v32 = vld [vmem:[#allocation5 + $0x50] sm:$0xf0]  ;;  %v2732_v34 = vor.u32 %v2161_v26, %v1903_v28  ;;  %v2734_v35 = vor.u32 %v2158_v30, %v1877_v29  ;;  %v2159_v37 = vld [vmem:[#allocation5 + $0x54] sm:$0xf0] }
  0x43   : > { %616 = vmatmul.bf16.vlgmr.msra.gmra.mxu3 %v2114_v36  ;;  %871 = vmatpush.bf16.msrb.mxu2 %v2680_v48  ;;  %v1885_v36 = vld [vmem:[#allocation5 + $0x48] sm:$0xf]  ;;  %v2157_v39 = vld [vmem:[#allocation5 + $0x4c] sm:$0xf]  ;;  %v2737_v40 = vor.u32 %v2156_v31, %v1879_v32  ;;  %v1887_v41 = vld [vmem:[#allocation5 + $0x58] sm:$0xf0] }
  0x44   : > { %884 = vmatpush.bf16.msrb.mxu3 %v2683_v49  ;;  %v1861_v43 = vld [vmem:[#allocation5 + $0x20] sm:$0xf]  ;;  %v2154_v44 = vld [vmem:[#allocation5 + $0x2c] sm:$0xf0]  ;;  %v2152_v45 = vld [vmem:[#allocation5 + $0x24] sm:$0xf]  ;;  %v2740_v47 = vor.u32 %v2159_v37, %v1885_v36  ;;  %v2744_v51 = vor.u32 %v2157_v39, %v1887_v41 }
  0x45   : > { %846 = vmatpush.bf16.msrb.mxu0 %v2685_v50  ;;  %v1863_v46 = vld [vmem:[#allocation5 + $0x30] sm:$0xf0]  ;;  %v2746_v52 = vor.u32 %v2154_v44, %v1861_v43  ;;  %v1869_v53 = vld [vmem:[#allocation5 + $0x28] sm:$0xf]  ;;  %v2155_v55 = vld [vmem:[#allocation5 + $0x34] sm:$0xf0] }
  0x46   : > { %859 = vmatpush.bf16.msrb.mxu1 %v2688_v54  ;;  %v2153_v56 = vld [vmem:[#allocation5 + $0x2c] sm:$0xf]  ;;  %v2749_v57 = vor.u32 %v2152_v45, %v1863_v46  ;;  %v1871_v58 = vld [vmem:[#allocation5 + $0x38] sm:$0xf0]  ;;  %v1845_v59 = vld [vmem:[#allocation5] sm:$0xf]  ;;  %v2752_v3 = vor.u32 %v2155_v55, %v1869_v53 }
  0x47   : > { %872 = vmatpush.bf16.msrb.mxu2 %v2691_v60  ;;  %v2150_v63 = vld [vmem:[#allocation5 + $0xc] sm:$0xf0]  ;;  %v2148_v0 = vld [vmem:[#allocation5 + $0x4] sm:$0xf]  ;;  %v1847_v1 = vld [vmem:[#allocation5 + $0x10] sm:$0xf0]  ;;  %v2756_v4 = vor.u32 %v2153_v56, %v1871_v58 }
  0x48   : > { %885 = vmatpush.bf16.msrb.mxu3 %v2695_v61  ;;  %v2758_v5 = vor.u32 %v2150_v63, %v1845_v59  ;;  %v1853_v6 = vld [vmem:[#allocation5 + $0x8] sm:$0xf]  ;;  %v2151_v7 = vld [vmem:[#allocation5 + $0x14] sm:$0xf0]  ;;  %v2761_v11 = vor.u32 %v2148_v0, %v1847_v1  ;;  %v2149_v12 = vld [vmem:[#allocation5 + $0xc] sm:$0xf] }
  0x49   : > { %847 = vmatpush.bf16.msrb.mxu0 %v2697_v62  ;;  %v1855_v13 = vld [vmem:[#allocation5 + $0x18] sm:$0xf0]  ;;  %v643_v15 = vld [vmem:[#allocation3] sm:$0xff]  ;;  %v2764_v16 = vor.u32 %v2151_v7, %v1853_v6 }
  0x4a   : > { %860 = vmatpush.bf16.msrb.mxu1 %v2700_v2  ;;  %v2768_v17 = vor.u32 %v2149_v12, %v1855_v13  ;;  %v652_v18 = vpack.c.bf16 %v643_v15, %v643_v15  ;;  %v369_v24 = vld [vmem:[%s3037_s3] sm:$0xf] }
  0x4b   : > { %873 = vmatpush.bf16.msrb.mxu2 %v2703_v8  ;;  %v371_v25 = vperm.slane %v369_v24, 0  ;;  %v372_v28 = vperm.slane %v369_v24, 1  ;;  %v373_v37 = vperm.slane %v369_v24, 2  ;;  %v374_v39 = vperm.slane %v369_v24, 3 }
  0x4c   : > { %886 = vmatpush.bf16.msrb.mxu3 %v2707_v9 }
  0x4d   : > { %848 = vmatpush.bf16.msrb.mxu0 %v2709_v10 }
  0x4e   : > { %861 = vmatpush.bf16.msrb.mxu1 %v2712_v14 }
  0x4f   : > { %874 = vmatpush.bf16.msrb.mxu2 %v2715_v20 }
  0x50   : > { %887 = vmatpush.bf16.msrb.mxu3 %v2720_v22  ;;  %564 = vmatmul.bf16.gmra.mxu0 %v2115_v21 }
  0x51   : > { %849 = vmatpush.bf16.msrb.mxu0 %v2722_v23  ;;  %583 = vmatmul.bf16.gmra.mxu1 %v2115_v21 }
  0x52   : > { %862 = vmatpush.bf16.msrb.mxu1 %v2725_v27  ;;  %602 = vmatmul.bf16.gmra.mxu2 %v2115_v21 }
  0x53   : > { %621 = vmatmul.bf16.gmra.mxu3 %v2115_v21  ;;  %875 = vmatpush.bf16.msrb.mxu2 %v2728_v33 }
  0x54   : > { %888 = vmatpush.bf16.msrb.mxu3 %v2732_v34 }
  0x55   : > { %850 = vmatpush.bf16.msrb.mxu0 %v2734_v35 }
  0x56   : > { %863 = vmatpush.bf16.msrb.mxu1 %v2737_v40 }
  0x57   : > { %876 = vmatpush.bf16.msrb.mxu2 %v2740_v47 }
  0x58   : > { %889 = vmatpush.bf16.msrb.mxu3 %v2744_v51 }
  0x59   : > { %851 = vmatpush.bf16.msrb.mxu0 %v2746_v52 }
  0x5a   : > { %864 = vmatpush.bf16.msrb.mxu1 %v2749_v57 }
  0x5b   : > { %877 = vmatpush.bf16.msrb.mxu2 %v2752_v3 }
  0x5c   : > { %890 = vmatpush.bf16.msrb.mxu3 %v2756_v4 }
  0x5d   : > { %852 = vmatpush.bf16.msrb.mxu0 %v2758_v5 }
  0x5e   : > { %865 = vmatpush.bf16.msrb.mxu1 %v2761_v11 }
  0x5f   : > { %878 = vmatpush.bf16.msrb.mxu2 %v2764_v16 }
  0x60   : > { %891 = vmatpush.bf16.msrb.mxu3 %v2768_v17  ;;  %853 = vmatmul.bf16.vlgmr.msrb.gmra.mxu0 %v652_v18 }
  0x61   : > { %972 = vmatpush.bf16.msra.mxu0 %v2676_v38  ;;  %866 = vmatmul.bf16.vlgmr.msrb.gmra.mxu1 %v652_v18 }
  0x62   : > { %985 = vmatpush.bf16.msra.mxu1 %v2678_v42  ;;  %879 = vmatmul.bf16.vlgmr.msrb.gmra.mxu2 %v652_v18 }
  0x63   : > { %998 = vmatpush.bf16.msra.mxu2 %v2680_v48  ;;  %892 = vmatmul.bf16.vlgmr.msrb.gmra.mxu3 %v652_v18 }
  0x64   : > { %1011 = vmatpush.bf16.msra.mxu3 %v2683_v49 }
  0x65   : > { %973 = vmatpush.bf16.msra.mxu0 %v2685_v50 }
  0x66   : > { %986 = vmatpush.bf16.msra.mxu1 %v2688_v54 }
  0x67   : > { %999 = vmatpush.bf16.msra.mxu2 %v2691_v60 }
  0x68   : > { %1012 = vmatpush.bf16.msra.mxu3 %v2695_v61 }
  0x69   : > { %974 = vmatpush.bf16.msra.mxu0 %v2697_v62 }
  0x6a   : > { %987 = vmatpush.bf16.msra.mxu1 %v2700_v2 }
  0x6b   : > { %1000 = vmatpush.bf16.msra.mxu2 %v2703_v8 }
  0x6c   : > { %1013 = vmatpush.bf16.msra.mxu3 %v2707_v9 }
  0x6d   : > { %975 = vmatpush.bf16.msra.mxu0 %v2709_v10 }
  0x6e   : > { %988 = vmatpush.bf16.msra.mxu1 %v2712_v14 }
  0x6f   : > { %1001 = vmatpush.bf16.msra.mxu2 %v2715_v20 }
  0x70   : > { %1014 = vmatpush.bf16.msra.mxu3 %v2720_v22 }
  0x71   : > { %976 = vmatpush.bf16.msra.mxu0 %v2722_v23 }
  0x72   : > { %989 = vmatpush.bf16.msra.mxu1 %v2725_v27 }
  0x73   : > { %1002 = vmatpush.bf16.msra.mxu2 %v2728_v33 }
  0x74   : > { %1015 = vmatpush.bf16.msra.mxu3 %v2732_v34 }
  0x75   : > { %977 = vmatpush.bf16.msra.mxu0 %v2734_v35 }
  0x76   : > { %990 = vmatpush.bf16.msra.mxu1 %v2737_v40 }
  0x77   : > { %1003 = vmatpush.bf16.msra.mxu2 %v2740_v47 }
  0x78   : > { %1016 = vmatpush.bf16.msra.mxu3 %v2744_v51 }
  0x79   : > { %978 = vmatpush.bf16.msra.mxu0 %v2746_v52 }
  0x7a   : > { %991 = vmatpush.bf16.msra.mxu1 %v2749_v57 }
  0x7b   : > { %1004 = vmatpush.bf16.msra.mxu2 %v2752_v3 }
  0x7c   : > { %1017 = vmatpush.bf16.msra.mxu3 %v2756_v4 }
  0x7d   : > { %979 = vmatpush.bf16.msra.mxu0 %v2758_v5 }
  0x7e   : > { %992 = vmatpush.bf16.msra.mxu1 %v2761_v11 }
  0x7f   : > { %1005 = vmatpush.bf16.msra.mxu2 %v2764_v16 }
  0x80   : > { %1018 = vmatpush.bf16.msra.mxu3 %v2768_v17 }
  0x81   : > { %1099 = vmatpush.bf16.msrb.mxu0 %v2676_v38 }
  0x82   : > { %1112 = vmatpush.bf16.msrb.mxu1 %v2678_v42 }
  0x83   : > { %1125 = vmatpush.bf16.msrb.mxu2 %v2680_v48 }
  0x84   : > { %1138 = vmatpush.bf16.msrb.mxu3 %v2683_v49 }
  0x85   : > { %1100 = vmatpush.bf16.msrb.mxu0 %v2685_v50 }
  0x86   : > { %1113 = vmatpush.bf16.msrb.mxu1 %v2688_v54 }
  0x87   : > { %1126 = vmatpush.bf16.msrb.mxu2 %v2691_v60 }
  0x88   : > { %1139 = vmatpush.bf16.msrb.mxu3 %v2695_v61 }
  0x89   : > { %1101 = vmatpush.bf16.msrb.mxu0 %v2697_v62 }
  0x8a   : > { %1114 = vmatpush.bf16.msrb.mxu1 %v2700_v2 }
  0x8b   : > { %1127 = vmatpush.bf16.msrb.mxu2 %v2703_v8 }
  0x8c   : > { %1140 = vmatpush.bf16.msrb.mxu3 %v2707_v9 }
  0x8d   : > { %1102 = vmatpush.bf16.msrb.mxu0 %v2709_v10 }
  0x8e   : > { %1115 = vmatpush.bf16.msrb.mxu1 %v2712_v14 }
  0x8f   : > { %1128 = vmatpush.bf16.msrb.mxu2 %v2715_v20 }
  0x90   : > { %1141 = vmatpush.bf16.msrb.mxu3 %v2720_v22 }
  0x91   : > { %1103 = vmatpush.bf16.msrb.mxu0 %v2722_v23 }
  0x92   : > { %1116 = vmatpush.bf16.msrb.mxu1 %v2725_v27 }
  0x93   : > { %1129 = vmatpush.bf16.msrb.mxu2 %v2728_v33 }
  0x94   : > { %1142 = vmatpush.bf16.msrb.mxu3 %v2732_v34 }
  0x95   : > { %1104 = vmatpush.bf16.msrb.mxu0 %v2734_v35 }
  0x96   : > { %1117 = vmatpush.bf16.msrb.mxu1 %v2737_v40 }
  0x97   : > { %1130 = vmatpush.bf16.msrb.mxu2 %v2740_v47 }
  0x98   : > { %1143 = vmatpush.bf16.msrb.mxu3 %v2744_v51 }
  0x99   : > { %1105 = vmatpush.bf16.msrb.mxu0 %v2746_v52 }
  0x9a   : > { %1118 = vmatpush.bf16.msrb.mxu1 %v2749_v57 }
  0x9b   : > { %1131 = vmatpush.bf16.msrb.mxu2 %v2752_v3 }
  0x9c   : > { %1144 = vmatpush.bf16.msrb.mxu3 %v2756_v4 }
  0x9d   : > { %1106 = vmatpush.bf16.msrb.mxu0 %v2758_v5 }
  0x9e   : > { %1119 = vmatpush.bf16.msrb.mxu1 %v2761_v11 }
  0x9f   : > { %1132 = vmatpush.bf16.msrb.mxu2 %v2764_v16 }
  0xa0   : > { %1145 = vmatpush.bf16.msrb.mxu3 %v2768_v17 }
  0xbd   : > { %v560_v19 = vpop.f32.mrf.mxu0 }
  0xbe   : > { %v579_v21 = vpop.f32.mrf.mxu1  ;;  %v561_v13 = vadd.f32 %v560_v19, %v371_v25 }
  0xbf   : > { %v580_v18 = vadd.f32 %v579_v21, %v372_v28 }
  0xc5   : > { %v598_v26 = vpop.f32.mrf.mxu2  ;;  %v562_v30 = vpop.f32.mrf.mxu0 }
  0xc6   : > { %v617_v29 = vpop.f32.mrf.mxu3  ;;  %v2840_v31 = vadd.f32 %v562_v30, %v371_v25  ;;  %v581_v32 = vpop.f32.mrf.mxu1 }
  0xc7   : > { %v2842_v36 = vadd.f32 %v581_v32, %v372_v28 }
  0xcd   : > { %v600_v41 = vpop.f32.mrf.mxu2  ;;  %v565_v45 = vpop.f32.mrf.mxu0 }
  0xce   : > { %v2844_v43 = vadd.f32 %v600_v41, %v373_v37  ;;  %v619_v44 = vpop.f32.mrf.mxu3  ;;  %v2848_v53 = vadd.f32 %v565_v45, %v371_v25  ;;  %v584_v55 = vpop.f32.mrf.mxu1 }
  0xcf   : > { %v2846_v46 = vadd.f32 %v619_v44, %v374_v39  ;;  %v2850_v56 = vadd.f32 %v584_v55, %v372_v28 }
  0xd5   : > { %v603_v58 = vpop.f32.mrf.mxu2  ;;  %v567_v0 = vpop.f32.mrf.mxu0 }
  0xd6   : > { %v2852_v59 = vadd.f32 %v603_v58, %v373_v37  ;;  %v622_v63 = vpop.f32.mrf.mxu3  ;;  %v2856_v6 = vadd.f32 %v567_v0, %v371_v25  ;;  %v586_v7 = vpop.f32.mrf.mxu1  ;;  %v618_v0 = vadd.f32 %v617_v29, %v374_v39 }
  0xd7   : > { %v2854_v1 = vadd.f32 %v622_v63, %v374_v39  ;;  %v2858_v12 = vadd.f32 %v586_v7, %v372_v28 }
  0xd8   : > { %3044 = vst [vmem:[#allocation11_spill] sm:$0xff] %v2852_v59 }
  0xd9   : > { %3045 = vst [vmem:[#allocation12_spill] sm:$0xff] %v2854_v1 }
  0xda   : > { %3046 = vst [vmem:[#allocation13_spill] sm:$0xff] %v2856_v6 }
  0xdb   : > { %3047 = vst [vmem:[#allocation14_spill] sm:$0xff] %v2858_v12 }
  0xdd   : > { %v605_v15 = vpop.f32.mrf.mxu2  ;;  %v854_v32 = vpop.f32.mrf.mxu0 }
  0xde   : > { %v2860_v24 = vadd.f32 %v605_v15, %v373_v37  ;;  %v624_v30 = vpop.f32.mrf.mxu3  ;;  %v897_v44 = vadd.f32 %v854_v32, %v561_v13  ;;  %v867_v45 = vpop.f32.mrf.mxu1 }
  0xdf   : > { %v2862_v41 = vadd.f32 %v624_v30, %v374_v39  ;;  %v898_v55 = vadd.f32 %v867_v45, %v580_v18  ;;  %v599_v30 = vadd.f32 %v598_v26, %v373_v37 }
  0xe0   : > { %3048 = vst [vmem:[#allocation15_spill] sm:$0xff] %v2860_v24  ;;  %v1971_v58 = vmul.f32 -1.442695, %v897_v44 }
  0xe1   : > { %3049 = vst [vmem:[#allocation16_spill] sm:$0xff] %v2862_v41  ;;  %v1972_v63 = vmul.f32 -1.442695, %v898_v55 }
  0xe2   : > { %2246 = vpow2.f32 %v1971_v58 }
  0xe3   : > { %2248 = vpow2.f32 %v1972_v63 }
  0xe5   : > { %v880_v6 = vpop.f32.mrf.mxu2  ;;  %v856_v12 = vpop.f32.mrf.mxu0 }
  0xe6   : > { %v893_v7 = vpop.f32.mrf.mxu3  ;;  %v869_v25 = vpop.f32.mrf.mxu1  ;;  %v899_v45 = vadd.f32 %v880_v6, %v599_v30 }
  0xe7   : > { %v900_v19 = vadd.f32 %v893_v7, %v618_v0 }
  0xe8   : > { %v2247_v21 = vpop.eup %2246 }
  0xe9   : > { %v1973_v28 = vmul.f32 -1.442695, %v900_v19  ;;  %v2249_v15 = vpop.eup %2248  ;;  %v904_v24 = vadd.f32 1.0, %v2247_v21 }
  0xea   : > { %v923_v59 = vadd.f32 1.0, %v2249_v15 }
  0xeb   : > { %2250 = vpow2.f32 %v1973_v28  ;;  %v916_v0 = vand.u32 2147483648, %v904_v24  ;;  %v914_v25 = vand.u32 2147483647, %v904_v24  ;;  %vm910_vm2 = vweird.f32 %v904_v24 }
  0xec   : > { %2252 = vrcp.f32 %v904_v24  ;;  %v935_v7 = vand.u32 2147483648, %v923_v59  ;;  %v933_v28 = vand.u32 2147483647, %v923_v59  ;;  %vm929_vm3 = vweird.f32 %v923_v59 }
  0xed   : > { %2254 = vrcp.f32 %v923_v59  ;;  %v882_v13 = vpop.f32.mrf.mxu2  ;;  %v917_v6 = vor.u32 1.1754944e-38, %v916_v0  ;;  %vm915_vm6 = vcmp.eq.f32.partialorder %v914_v25, 8.507059e+37 }
  0xee   : > { %v895_v18 = vpop.f32.mrf.mxu3  ;;  %v936_v13 = vor.u32 1.1754944e-38, %v935_v7  ;;  %vm934_vm7 = vcmp.eq.f32.partialorder %v933_v28, 8.507059e+37 }
  0xef   : > { %v644_v18 = vld [vmem:[#allocation4] sm:$0xff] }
  0xf1   : > { %v2251_v32 = vpop.eup %2250 }
  0xf2   : > { %v2253_v44 = vpop.eup %2252  ;;  %v943_v29 = vadd.f32 1.0, %v2251_v32 }
  0xf3   : > { %v2255_v39 = vpop.eup %2254  ;;  %v906_v55 = vmul.f32 %v2253_v44, %v904_v24  ;;  %vm911_vm0 = vweird.f32 %v2253_v44 }
  0xf4   : > { %v925_v12 = vmul.f32 %v2255_v39, %v923_v59  ;;  %2256 = vrcp.f32 %v943_v29  ;;  %vm930_vm1 = vweird.f32 %v2255_v39  ;;  %vm912_vm4 = vmor %vm910_vm2, %vm911_vm0  ;;  %v955_v0 = vand.u32 2147483648, %v943_v29 }
  0xf5   : > { %v907_v58 = vsub.f32 1.0, %v906_v55  ;;  %2258 = vtanh.f32 %v899_v45  ;;  %vm931_vm5 = vmor %vm929_vm3, %vm930_vm1  ;;  %vm949_vm9 = vweird.f32 %v943_v29 }
  0xf6   : > { %v926_v63 = vsub.f32 1.0, %v925_v12  ;;  %v956_v25 = vor.u32 1.1754944e-38, %v955_v0 }
  0xf7   : > { %v908_v19 = vmul.f32 %v2253_v44, %v907_v58 }
  0xf8   : > { %v927_v21 = vmul.f32 %v2255_v39, %v926_v63 }
  0xf9   : > { %v909_v26 = vadd.f32 %v2253_v44, %v908_v19 }
  0xfa   : > { %v2257_v37 = vpop.eup %2256  ;;  %v928_v15 = vadd.f32 %v2255_v39, %v927_v21 }
  0xfb   : > { %v913_v30 = vsel %vm912_vm4, %v2253_v44, %v909_v26  ;;  %v945_v32 = vmul.f32 %v2257_v37, %v943_v29  ;;  %v2259_v45 = vpop.eup %2258  ;;  %vm950_vm8 = vweird.f32 %v2257_v37  ;;  %v953_v44 = vand.u32 2147483647, %v943_v29 }
  0xfc   : > { %v918_v55 = vsel %vm915_vm6, %v917_v6, %v913_v30  ;;  %v932_v12 = vsel %vm931_vm5, %v2255_v39, %v928_v15  ;;  %vm951_vm10 = vmor %vm949_vm9, %vm950_vm8 }
  0xfd   : > { %v937_v58 = vsel %vm934_vm7, %v936_v13, %v932_v12  ;;  %v960_v63 = vmul.f32 %v2259_v45, %v918_v55  ;;  %v946_v41 = vsub.f32 1.0, %v945_v32  ;;  %vm954_vm11 = vcmp.eq.f32.partialorder %v953_v44, 8.507059e+37 }
  0xfe   : > { %v959_v19 = vmul.f32 %v937_v58, %v644_v18 }
  0xff   : > { %v947_v24 = vmul.f32 %v2257_v37, %v946_v41 }
 0x100   : > { %v2864_v1 = vadd.f32 %v960_v63, %v959_v19 }
 0x101   : > { %v948_v59 = vadd.f32 %v2257_v37, %v947_v24 }
 0x102   : > { %2260 = vtanh.f32 %v2864_v1 }
 0x103   : > { %v952_v7 = vsel %vm951_vm10, %v2257_v37, %v948_v59 }
 0x104   : > { %v957_v21 = vsel %vm954_vm11, %v956_v25, %v952_v7 }
 0x108   : > { %v2261_v39 = vpop.eup %2260 }
 0x109   : > { %v963_v28 = vmul.f32 %v2261_v39, %v957_v21 }
 0x10b   : > { %v971_v26 = vpack.c.bf16 %v963_v28, %v963_v28 }
 0x10d   : > { %980 = vmatmul.bf16.vlgmr.msra.gmra.mxu0 %v971_v26  ;;  %993 = vmatmul.bf16.vlgmr.msra.gmra.mxu1 %v971_v26 }
 0x10e   : > { %1006 = vmatmul.bf16.vlgmr.msra.gmra.mxu2 %v971_v26  ;;  %1019 = vmatmul.bf16.vlgmr.msra.gmra.mxu3 %v971_v26 }
 0x10f   : > { %1226 = vmatpush.bf16.msra.mxu0 %v2676_v38  ;;  %1239 = vmatpush.bf16.msra.mxu1 %v2678_v42 }
 0x110   : > { %1252 = vmatpush.bf16.msra.mxu2 %v2680_v48  ;;  %1265 = vmatpush.bf16.msra.mxu3 %v2683_v49 }
 0x113   : > { %1227 = vmatpush.bf16.msra.mxu0 %v2685_v50  ;;  %1240 = vmatpush.bf16.msra.mxu1 %v2688_v54 }
 0x114   : > { %1253 = vmatpush.bf16.msra.mxu2 %v2691_v60  ;;  %1266 = vmatpush.bf16.msra.mxu3 %v2695_v61 }
 0x117   : > { %1228 = vmatpush.bf16.msra.mxu0 %v2697_v62  ;;  %1241 = vmatpush.bf16.msra.mxu1 %v2700_v2 }
 0x118   : > { %1254 = vmatpush.bf16.msra.mxu2 %v2703_v8  ;;  %1267 = vmatpush.bf16.msra.mxu3 %v2707_v9 }
 0x11b   : > { %1229 = vmatpush.bf16.msra.mxu0 %v2709_v10  ;;  %1242 = vmatpush.bf16.msra.mxu1 %v2712_v14 }
 0x11c   : > { %1255 = vmatpush.bf16.msra.mxu2 %v2715_v20  ;;  %1268 = vmatpush.bf16.msra.mxu3 %v2720_v22 }
 0x11f   : > { %1230 = vmatpush.bf16.msra.mxu0 %v2722_v23  ;;  %1243 = vmatpush.bf16.msra.mxu1 %v2725_v27 }
 0x120   : > { %1256 = vmatpush.bf16.msra.mxu2 %v2728_v33  ;;  %1269 = vmatpush.bf16.msra.mxu3 %v2732_v34 }
 0x123   : > { %1231 = vmatpush.bf16.msra.mxu0 %v2734_v35  ;;  %1244 = vmatpush.bf16.msra.mxu1 %v2737_v40 }
 0x124   : > { %1257 = vmatpush.bf16.msra.mxu2 %v2740_v47  ;;  %1270 = vmatpush.bf16.msra.mxu3 %v2744_v51 }
 0x127   : > { %1232 = vmatpush.bf16.msra.mxu0 %v2746_v52  ;;  %1245 = vmatpush.bf16.msra.mxu1 %v2749_v57 }
 0x128   : > { %1258 = vmatpush.bf16.msra.mxu2 %v2752_v3  ;;  %1271 = vmatpush.bf16.msra.mxu3 %v2756_v4 }
 0x12b   : > { %1233 = vmatpush.bf16.msra.mxu0 %v2758_v5  ;;  %1246 = vmatpush.bf16.msra.mxu1 %v2761_v11 }
 0x12c   : > { %1259 = vmatpush.bf16.msra.mxu2 %v2764_v16  ;;  %1272 = vmatpush.bf16.msra.mxu3 %v2768_v17 }
 0x18a   : > { %v981_v38 = vpop.f32.mrf.mxu0  ;;  %v994_v42 = vpop.f32.mrf.mxu1 }
 0x18b   : > { %v1024_v48 = vadd.f32 %v981_v38, %v2840_v31  ;;  %v1025_v49 = vadd.f32 %v994_v42, %v2842_v36 }
 0x18d   : > { %v1974_v50 = vmul.f32 -1.442695, %v1024_v48  ;;  %v1975_v54 = vmul.f32 -1.442695, %v1025_v49 }
 0x18f   : > { %2262 = vpow2.f32 %v1974_v50  ;;  %v3050_v50 = vld [vmem:[#allocation12_spill] sm:$0xff] }
 0x190   : > { %2264 = vpow2.f32 %v1975_v54 }
 0x191   : > { %v1007_v60 = vpop.f32.mrf.mxu2  ;;  %v1020_v61 = vpop.f32.mrf.mxu3 }
 0x192   : > { %v1027_v62 = vadd.f32 %v1020_v61, %v2846_v46  ;;  %v983_v2 = vpop.f32.mrf.mxu0  ;;  %v996_v8 = vpop.f32.mrf.mxu1  ;;  %v1026_v40 = vadd.f32 %v1007_v60, %v2844_v43 }
 0x194   : > { %v1976_v9 = vmul.f32 -1.442695, %v1027_v62 }
 0x195   : > { %v2263_v10 = vpop.eup %2262 }
 0x196   : > { %v2265_v14 = vpop.eup %2264  ;;  %v1031_v20 = vadd.f32 1.0, %v2263_v10  ;;  %2266 = vpow2.f32 %v1976_v9 }
 0x197   : > { %v1050_v22 = vadd.f32 1.0, %v2265_v14 }
 0x198   : > { %2268 = vrcp.f32 %v1031_v20  ;;  %v1043_v4 = vand.u32 2147483648, %v1031_v20  ;;  %v1041_v16 = vand.u32 2147483647, %v1031_v20  ;;  %vm1037_vm14 = vweird.f32 %v1031_v20 }
 0x199   : > { %2270 = vrcp.f32 %v1050_v22  ;;  %v1009_v23 = vpop.f32.mrf.mxu2  ;;  %v1022_v27 = vpop.f32.mrf.mxu3  ;;  %v1062_v5 = vand.u32 2147483648, %v1050_v22  ;;  %v1060_v31 = vand.u32 2147483647, %v1050_v22  ;;  %vm1056_vm15 = vweird.f32 %v1050_v22 }
 0x19a   : > { %v1044_v43 = vor.u32 1.1754944e-38, %v1043_v4  ;;  %vm1042_vm2 = vcmp.eq.f32.partialorder %v1041_v16, 8.507059e+37  ;;  %v3051_v23 = vld [vmem:[#allocation11_spill] sm:$0xff] }
 0x19b   : > { %v1063_v37 = vor.u32 1.1754944e-38, %v1062_v5  ;;  %vm1061_vm3 = vcmp.eq.f32.partialorder %v1060_v31, 8.507059e+37 }
 0x19c   : > { %v2267_v33 = vpop.eup %2266 }
 0x19d   : > { %v1070_v34 = vadd.f32 1.0, %v2267_v33 }
 0x19e   : > { %v2269_v35 = vpop.eup %2268 }
 0x19f   : > { %v2271_v47 = vpop.eup %2270  ;;  %v1033_v51 = vmul.f32 %v2269_v35, %v1031_v20  ;;  %2272 = vrcp.f32 %v1070_v34  ;;  %vm1038_vm12 = vweird.f32 %v2269_v35  ;;  %v1082_v19 = vand.u32 2147483648, %v1070_v34 }
 0x1a0   : > { %v1052_v52 = vmul.f32 %v2271_v47, %v1050_v22  ;;  %2274 = vtanh.f32 %v1026_v40  ;;  %vm1057_vm13 = vweird.f32 %v2271_v47  ;;  %vm1039_vm0 = vmor %vm1037_vm14, %vm1038_vm12  ;;  %vm1076_vm5 = vweird.f32 %v1070_v34 }
 0x1a1   : > { %v1034_v57 = vsub.f32 1.0, %v1033_v51  ;;  %vm1058_vm1 = vmor %vm1056_vm15, %vm1057_vm13  ;;  %v1080_v24 = vand.u32 2147483647, %v1070_v34  ;;  %v1083_v0 = vor.u32 1.1754944e-38, %v1082_v19 }
 0x1a2   : > { %v1053_v3 = vsub.f32 1.0, %v1052_v52 }
 0x1a3   : > { %v1035_v11 = vmul.f32 %v2269_v35, %v1034_v57  ;;  %vm1081_vm7 = vcmp.eq.f32.partialorder %v1080_v24, 8.507059e+37 }
 0x1a4   : > { %v1054_v17 = vmul.f32 %v2271_v47, %v1053_v3 }
 0x1a5   : > { %v2273_v36 = vpop.eup %2272  ;;  %v1036_v46 = vadd.f32 %v2269_v35, %v1035_v11 }
 0x1a6   : > { %v1055_v41 = vadd.f32 %v2271_v47, %v1054_v17  ;;  %v1072_v29 = vmul.f32 %v2273_v36, %v1070_v34  ;;  %v2275_v15 = vpop.eup %2274  ;;  %vm1077_vm4 = vweird.f32 %v2273_v36 }
 0x1a7   : > { %v1040_v6 = vsel %vm1039_vm0, %v2269_v35, %v1036_v46  ;;  %vm1078_vm6 = vmor %vm1076_vm5, %vm1077_vm4 }
 0x1a8   : > { %v1045_v13 = vsel %vm1042_vm2, %v1044_v43, %v1040_v6  ;;  %v1059_v18 = vsel %vm1058_vm1, %v2271_v47, %v1055_v41  ;;  %v1073_v30 = vsub.f32 1.0, %v1072_v29 }
 0x1a9   : > { %v1064_v32 = vsel %vm1061_vm3, %v1063_v37, %v1059_v18  ;;  %v1087_v45 = vmul.f32 %v2275_v15, %v1045_v13 }
 0x1aa   : > { %v1086_v55 = vmul.f32 %v1064_v32, %v2864_v1  ;;  %v1074_v12 = vmul.f32 %v2273_v36, %v1073_v30 }
 0x1ac   : > { %v2904_v58 = vadd.f32 %v1087_v45, %v1086_v55  ;;  %v1075_v63 = vadd.f32 %v2273_v36, %v1074_v12 }
 0x1ae   : > { %2276 = vtanh.f32 %v2904_v58  ;;  %v1079_v59 = vsel %vm1078_vm6, %v2273_v36, %v1075_v63 }
 0x1af   : > { %v1084_v7 = vsel %vm1081_vm7, %v1083_v0, %v1079_v59 }
 0x1b4   : > { %v2277_v44 = vpop.eup %2276 }
 0x1b5   : > { %v1090_v25 = vmul.f32 %v2277_v44, %v1084_v7 }
 0x1b7   : > { %v1098_v39 = vpack.c.bf16 %v1090_v25, %v1090_v25  ;;  %v3052_v25 = vld [vmem:[#allocation13_spill] sm:$0xff] }
 0x1b9   : > { %1107 = vmatmul.bf16.vlgmr.msrb.gmra.mxu0 %v1098_v39  ;;  %1120 = vmatmul.bf16.vlgmr.msrb.gmra.mxu1 %v1098_v39 }
 0x1ba   : > { %1133 = vmatmul.bf16.vlgmr.msrb.gmra.mxu2 %v1098_v39  ;;  %1146 = vmatmul.bf16.vlgmr.msrb.gmra.mxu3 %v1098_v39 }
 0x236   : > { %v1108_v1 = vpop.f32.mrf.mxu0  ;;  %v1121_v21 = vpop.f32.mrf.mxu1 }
 0x237   : > { %v1151_v28 = vadd.f32 %v1108_v1, %v2848_v53  ;;  %v1152_v26 = vadd.f32 %v1121_v21, %v2850_v56  ;;  %v3053_v1 = vld [vmem:[#allocation14_spill] sm:$0xff] }
 0x239   : > { %v1977_v38 = vmul.f32 -1.442695, %v1151_v28  ;;  %v1978_v42 = vmul.f32 -1.442695, %v1152_v26 }
 0x23b   : > { %2278 = vpow2.f32 %v1977_v38 }
 0x23c   : > { %2280 = vpow2.f32 %v1978_v42 }
 0x23d   : > { %v1134_v48 = vpop.f32.mrf.mxu2  ;;  %v1147_v49 = vpop.f32.mrf.mxu3 }
 0x23e   : > { %v1154_v54 = vadd.f32 %v1147_v49, %v3050_v50  ;;  %v1110_v60 = vpop.f32.mrf.mxu0  ;;  %v1123_v61 = vpop.f32.mrf.mxu1  ;;  %v1153_v27 = vadd.f32 %v1134_v48, %v3051_v23  ;;  %v3054_v48 = vld [vmem:[#allocation16_spill] sm:$0xff] }
 0x240   : > { %v1979_v62 = vmul.f32 -1.442695, %v1154_v54 }
 0x241   : > { %v2279_v2 = vpop.eup %2278 }
 0x242   : > { %v2281_v8 = vpop.eup %2280  ;;  %v1158_v9 = vadd.f32 1.0, %v2279_v2  ;;  %2282 = vpow2.f32 %v1979_v62 }
 0x243   : > { %v1177_v10 = vadd.f32 1.0, %v2281_v8 }
 0x244   : > { %2284 = vrcp.f32 %v1158_v9  ;;  %v1170_v51 = vand.u32 2147483648, %v1158_v9  ;;  %v1168_v3 = vand.u32 2147483647, %v1158_v9  ;;  %vm1164_vm10 = vweird.f32 %v1158_v9 }
 0x245   : > { %2286 = vrcp.f32 %v1177_v10  ;;  %v1136_v53 = vpop.f32.mrf.mxu2  ;;  %v1149_v56 = vpop.f32.mrf.mxu3  ;;  %v1189_v52 = vand.u32 2147483648, %v1177_v10  ;;  %v1187_v5 = vand.u32 2147483647, %v1177_v10  ;;  %vm1183_vm11 = vweird.f32 %v1177_v10 }
 0x246   : > { %v1171_v17 = vor.u32 1.1754944e-38, %v1170_v51  ;;  %vm1169_vm14 = vcmp.eq.f32.partialorder %v1168_v3, 8.507059e+37 }
 0x247   : > { %v1190_v46 = vor.u32 1.1754944e-38, %v1189_v52  ;;  %vm1188_vm15 = vcmp.eq.f32.partialorder %v1187_v5, 8.507059e+37 }
 0x248   : > { %v2283_v14 = vpop.eup %2282 }
 0x249   : > { %v1197_v20 = vadd.f32 1.0, %v2283_v14 }
 0x24a   : > { %v2285_v22 = vpop.eup %2284 }
 0x24b   : > { %v2287_v33 = vpop.eup %2286  ;;  %v1160_v34 = vmul.f32 %v2285_v22, %v1158_v9  ;;  %2288 = vrcp.f32 %v1197_v20  ;;  %vm1165_vm8 = vweird.f32 %v2285_v22  ;;  %v1209_v55 = vand.u32 2147483648, %v1197_v20 }
 0x24c   : > { %v1179_v35 = vmul.f32 %v2287_v33, %v1177_v10  ;;  %2290 = vtanh.f32 %v1153_v27  ;;  %vm1184_vm9 = vweird.f32 %v2287_v33  ;;  %vm1166_vm12 = vmor %vm1164_vm10, %vm1165_vm8  ;;  %vm1203_vm1 = vweird.f32 %v1197_v20 }
 0x24d   : > { %v1161_v40 = vsub.f32 1.0, %v1160_v34  ;;  %vm1185_vm13 = vmor %vm1183_vm11, %vm1184_vm9  ;;  %v1207_v12 = vand.u32 2147483647, %v1197_v20  ;;  %v1210_v19 = vor.u32 1.1754944e-38, %v1209_v55 }
 0x24e   : > { %v1180_v47 = vsub.f32 1.0, %v1179_v35 }
 0x24f   : > { %v1162_v57 = vmul.f32 %v2285_v22, %v1161_v40  ;;  %vm1208_vm3 = vcmp.eq.f32.partialorder %v1207_v12, 8.507059e+37 }
 0x250   : > { %v1181_v4 = vmul.f32 %v2287_v33, %v1180_v47 }
 0x251   : > { %v2289_v11 = vpop.eup %2288  ;;  %v1163_v16 = vadd.f32 %v2285_v22, %v1162_v57 }
 0x252   : > { %v1182_v31 = vadd.f32 %v2287_v33, %v1181_v4  ;;  %v1199_v36 = vmul.f32 %v2289_v11, %v1197_v20  ;;  %v2291_v41 = vpop.eup %2290  ;;  %vm1204_vm0 = vweird.f32 %v2289_v11  ;;  %v3055_v20 = vld [vmem:[#allocation15_spill] sm:$0xff] }
 0x253   : > { %v1167_v43 = vsel %vm1166_vm12, %v2285_v22, %v1163_v16  ;;  %vm1205_vm2 = vmor %vm1203_vm1, %vm1204_vm0 }
 0x254   : > { %v1172_v29 = vsel %vm1169_vm14, %v1171_v17, %v1167_v43  ;;  %v1186_v37 = vsel %vm1185_vm13, %v2287_v33, %v1182_v31  ;;  %v1200_v6 = vsub.f32 1.0, %v1199_v36 }
 0x255   : > { %v1191_v15 = vsel %vm1188_vm15, %v1190_v46, %v1186_v37  ;;  %v1214_v13 = vmul.f32 %v2291_v41, %v1172_v29 }
 0x256   : > { %v1213_v18 = vmul.f32 %v1191_v15, %v2904_v58  ;;  %v1201_v30 = vmul.f32 %v2289_v11, %v1200_v6 }
 0x258   : > { %v2912_v32 = vadd.f32 %v1214_v13, %v1213_v18  ;;  %v1202_v45 = vadd.f32 %v2289_v11, %v1201_v30 }
 0x25a   : > { %2292 = vtanh.f32 %v2912_v32  ;;  %v1206_v63 = vsel %vm1205_vm2, %v2289_v11, %v1202_v45 }
 0x25b   : > { %v1211_v59 = vsel %vm1208_vm3, %v1210_v19, %v1206_v63 }
 0x260   : > { %v2293_v24 = vpop.eup %2292 }
 0x261   : > { %v1217_v0 = vmul.f32 %v2293_v24, %v1211_v59 }
 0x263   : > { %v1225_v44 = vpack.c.bf16 %v1217_v0, %v1217_v0 }
 0x265   : > { %1234 = vmatmul.bf16.vlgmr.msra.gmra.mxu0 %v1225_v44  ;;  %1247 = vmatmul.bf16.vlgmr.msra.gmra.mxu1 %v1225_v44 }
 0x266   : > { %1260 = vmatmul.bf16.vlgmr.msra.gmra.mxu2 %v1225_v44  ;;  %1273 = vmatmul.bf16.vlgmr.msra.gmra.mxu3 %v1225_v44 }
 0x2e2   : > { %v1235_v58 = vpop.f32.mrf.mxu0  ;;  %v1248_v7 = vpop.f32.mrf.mxu1 }
 0x2e3   : > { %v1278_v39 = vadd.f32 %v1235_v58, %v3052_v25  ;;  %v1279_v21 = vadd.f32 %v1248_v7, %v3053_v1 }
 0x2e5   : > { %v1980_v28 = vmul.f32 -1.442695, %v1278_v39  ;;  %v1981_v26 = vmul.f32 -1.442695, %v1279_v21 }
 0x2e7   : > { %2294 = vpow2.f32 %v1980_v28 }
 0x2e8   : > { %2296 = vpow2.f32 %v1981_v26 }
 0x2e9   : > { %v1261_v38 = vpop.f32.mrf.mxu2  ;;  %v1274_v42 = vpop.f32.mrf.mxu3 }
 0x2ea   : > { %v1281_v49 = vadd.f32 %v1274_v42, %v3054_v48  ;;  %v1237_v50 = vpop.f32.mrf.mxu0  ;;  %v1250_v54 = vpop.f32.mrf.mxu1  ;;  %v1280_v22 = vadd.f32 %v1261_v38, %v3055_v20 }
 0x2ec   : > { %v1982_v60 = vmul.f32 -1.442695, %v1281_v49 }
 0x2ed   : > { %v2295_v61 = vpop.eup %2294 }
 0x2ee   : > { %v2297_v62 = vpop.eup %2296  ;;  %v1285_v2 = vadd.f32 1.0, %v2295_v61  ;;  %2298 = vpow2.f32 %v1982_v60 }
 0x2ef   : > { %v1304_v8 = vadd.f32 1.0, %v2297_v62 }
 0x2f0   : > { %2300 = vrcp.f32 %v1285_v2  ;;  %v1297_v40 = vand.u32 2147483648, %v1285_v2  ;;  %v1295_v52 = vand.u32 2147483647, %v1285_v2  ;;  %vm1291_vm6 = vweird.f32 %v1285_v2 }
 0x2f1   : > { %2302 = vrcp.f32 %v1304_v8  ;;  %v1263_v9 = vpop.f32.mrf.mxu2  ;;  %v1276_v10 = vpop.f32.mrf.mxu3  ;;  %v1316_v47 = vand.u32 2147483648, %v1304_v8  ;;  %v1314_v3 = vand.u32 2147483647, %v1304_v8  ;;  %vm1310_vm7 = vweird.f32 %v1304_v8 }
 0x2f2   : > { %v1298_v11 = vor.u32 1.1754944e-38, %v1297_v40  ;;  %vm1296_vm10 = vcmp.eq.f32.partialorder %v1295_v52, 8.507059e+37 }
 0x2f3   : > { %v1317_v31 = vor.u32 1.1754944e-38, %v1316_v47  ;;  %vm1315_vm11 = vcmp.eq.f32.partialorder %v1314_v3, 8.507059e+37 }
 0x2f4   : > { %v2299_v53 = vpop.eup %2298 }
 0x2f5   : > { %v1324_v56 = vadd.f32 1.0, %v2299_v53 }
 0x2f6   : > { %v2301_v14 = vpop.eup %2300 }
 0x2f7   : > { %v2303_v23 = vpop.eup %2302  ;;  %v1287_v27 = vmul.f32 %v2301_v14, %v1285_v2  ;;  %2304 = vrcp.f32 %v1324_v56  ;;  %vm1292_vm4 = vweird.f32 %v2301_v14  ;;  %v1336_v45 = vand.u32 2147483648, %v1324_v56 }
 0x2f8   : > { %v1306_v33 = vmul.f32 %v2303_v23, %v1304_v8  ;;  %2306 = vtanh.f32 %v1280_v22  ;;  %vm1311_vm5 = vweird.f32 %v2303_v23  ;;  %vm1293_vm8 = vmor %vm1291_vm6, %vm1292_vm4  ;;  %vm1330_vm13 = vweird.f32 %v1324_v56 }
 0x2f9   : > { %v1288_v34 = vsub.f32 1.0, %v1287_v27  ;;  %vm1312_vm9 = vmor %vm1310_vm7, %vm1311_vm5  ;;  %v1334_v55 = vand.u32 2147483647, %v1324_v56  ;;  %v1337_v63 = vor.u32 1.1754944e-38, %v1336_v45 }
 0x2fa   : > { %v1307_v35 = vsub.f32 1.0, %v1306_v33 }
 0x2fb   : > { %v1289_v51 = vmul.f32 %v2301_v14, %v1288_v34  ;;  %vm1335_vm15 = vcmp.eq.f32.partialorder %v1334_v55, 8.507059e+37 }
 0x2fc   : > { %v1308_v57 = vmul.f32 %v2303_v23, %v1307_v35 }
 0x2fd   : > { %v2305_v4 = vpop.eup %2304  ;;  %v1290_v5 = vadd.f32 %v2301_v14, %v1289_v51 }
 0x2fe   : > { %v1309_v16 = vadd.f32 %v2303_v23, %v1308_v57  ;;  %v1326_v17 = vmul.f32 %v2305_v4, %v1324_v56  ;;  %v2307_v46 = vpop.eup %2306  ;;  %vm1331_vm12 = vweird.f32 %v2305_v4 }
 0x2ff   : > { %v1294_v36 = vsel %vm1293_vm8, %v2301_v14, %v1290_v5  ;;  %vm1332_vm14 = vmor %vm1330_vm13, %vm1331_vm12 }
 0x300   : > { %v1299_v43 = vsel %vm1296_vm10, %v1298_v11, %v1294_v36  ;;  %v1313_v41 = vsel %vm1312_vm9, %v2303_v23, %v1309_v16  ;;  %v1327_v29 = vsub.f32 1.0, %v1326_v17 }
 0x301   : > { %v1318_v37 = vsel %vm1315_vm11, %v1317_v31, %v1313_v41  ;;  %v1341_v6 = vmul.f32 %v2307_v46, %v1299_v43 }
 0x302   : > { %v1340_v15 = vmul.f32 %v1318_v37, %v2912_v32  ;;  %v1328_v13 = vmul.f32 %v2305_v4, %v1327_v29 }
 0x304   : > { %v1342_v18 = vadd.f32 %v1341_v6, %v1340_v15  ;;  %v1329_v30 = vadd.f32 %v2305_v4, %v1328_v13 }
 0x306   : > { %2308 = vtanh.f32 %v1342_v18  ;;  %1346 = vst [vmem:[#allocation4] sm:$0xff] %v1342_v18  ;;  %v1333_v12 = vsel %vm1332_vm14, %v2305_v4, %v1329_v30 }
 0x307   : > { %v1338_v24 = vsel %vm1335_vm15, %v1337_v63, %v1333_v12 }
 0x30b   : > { %1350 = sbr.rel (%p1983_p8) target bundleno = 1091 (0x443), region = 68 }
 0x30c   : > { %v2309_v19 = vpop.eup %2308 }
 0x30d   : > { %v2920_v59 = vmul.f32 %v2309_v19, %v1338_v24 }
 0x30f   : > { %1345 = vst [vmem:[#allocation3] sm:$0xff] %v2920_v59 }
 0x310   : > { %v2042_v32 = vld [vmem:[%s3038_s4 + $0x70] sm:$0xf]  ;;  %v2195_v0 = vld [vmem:[%s3038_s4 + $0x74] sm:$0xf0]  ;;  %v2194_v44 = vld [vmem:[%s3038_s4 + $0x74] sm:$0xf]  ;;  %v1351_v63 = vpack.c.bf16 %v2920_v59, %v2920_v59 }
 0x311   : > { %v2043_v58 = vor.u32 %v2195_v0, %v2042_v32  ;;  %v2044_v7 = vld [vmem:[%s3038_s4 + $0x78] sm:$0xf0]  ;;  %v2034_v25 = vld [vmem:[%s3038_s4 + $0x60] sm:$0xf]  ;;  %v2193_v39 = vld [vmem:[%s3038_s4 + $0x64] sm:$0xf0] }
 0x312   : > { %v2047_v1 = vor.u32 %v2194_v44, %v2044_v7  ;;  %v2192_v21 = vld [vmem:[%s3038_s4 + $0x64] sm:$0xf]  ;;  %v2036_v28 = vld [vmem:[%s3038_s4 + $0x68] sm:$0xf0]  ;;  %v2035_v26 = vor.u32 %v2193_v39, %v2034_v25  ;;  %v2026_v42 = vld [vmem:[%s3038_s4 + $0x50] sm:$0xf] }
 0x313   : > { %1454 = vmatpush.bf16.msra.mxu0 %v2043_v58  ;;  %v2039_v38 = vor.u32 %v2192_v21, %v2036_v28  ;;  %v2191_v48 = vld [vmem:[%s3038_s4 + $0x54] sm:$0xf0]  ;;  %v2190_v49 = vld [vmem:[%s3038_s4 + $0x54] sm:$0xf]  ;;  %v2028_v50 = vld [vmem:[%s3038_s4 + $0x58] sm:$0xf0] }
 0x314   : > { %1467 = vmatpush.bf16.msra.mxu1 %v2047_v1  ;;  %v2027_v54 = vor.u32 %v2191_v48, %v2026_v42  ;;  %v2031_v60 = vor.u32 %v2190_v49, %v2028_v50  ;;  %v2018_v61 = vld [vmem:[%s3038_s4 + $0x40] sm:$0xf]  ;;  %v2189_v62 = vld [vmem:[%s3038_s4 + $0x44] sm:$0xf0]  ;;  %v2188_v2 = vld [vmem:[%s3038_s4 + $0x44] sm:$0xf] }
 0x315   : > { %v2020_v8 = vld [vmem:[%s3038_s4 + $0x48] sm:$0xf0]  ;;  %v2019_v10 = vor.u32 %v2189_v62, %v2018_v61  ;;  %v2010_v14 = vld [vmem:[%s3038_s4 + $0x30] sm:$0xf]  ;;  %v2187_v20 = vld [vmem:[%s3038_s4 + $0x34] sm:$0xf0] }
 0x316   : > { %v2203_v9 = vld [vmem:[#allocation7 + $0x38] sm:$0xff]  ;;  %v2023_v56 = vor.u32 %v2188_v2, %v2020_v8  ;;  %v2202_v22 = vld [vmem:[#allocation7 + $0x30] sm:$0xff]  ;;  %v2186_v23 = vld [vmem:[%s3038_s4 + $0x34] sm:$0xf]  ;;  %v2011_v34 = vor.u32 %v2187_v20, %v2010_v14 }
 0x317   : > { %1455 = vmatpush.bf16.msra.mxu0 %v2035_v26  ;;  %v2211_v53 = vld [vmem:[#allocation7 + $0x78] sm:$0xff]  ;;  %1616 = vmatpush.bf16.msra.mxu2 %v2203_v9  ;;  %v2012_v27 = vld [vmem:[%s3038_s4 + $0x38] sm:$0xf0]  ;;  %v2210_v33 = vld [vmem:[#allocation7 + $0x70] sm:$0xff] }
 0x318   : > { %1468 = vmatpush.bf16.msra.mxu1 %v2039_v38  ;;  %1629 = vmatpush.bf16.msra.mxu3 %v2211_v53  ;;  %v2015_v35 = vor.u32 %v2186_v23, %v2012_v27  ;;  %v2002_v40 = vld [vmem:[%s3038_s4 + $0x20] sm:$0xf]  ;;  %v2185_v47 = vld [vmem:[%s3038_s4 + $0x24] sm:$0xf0]  ;;  %v2201_v51 = vld [vmem:[#allocation7 + $0x28] sm:$0xff] }
 0x319   : > { %v2184_v52 = vld [vmem:[%s3038_s4 + $0x24] sm:$0xf]  ;;  %v2004_v57 = vld [vmem:[%s3038_s4 + $0x28] sm:$0xf0]  ;;  %v2209_v3 = vld [vmem:[#allocation7 + $0x68] sm:$0xff]  ;;  %v2003_v4 = vor.u32 %v2185_v47, %v2002_v40 }
 0x31a   : > { %v2007_v5 = vor.u32 %v2184_v52, %v2004_v57  ;;  %v1994_v11 = vld [vmem:[%s3038_s4 + $0x10] sm:$0xf]  ;;  %v2183_v16 = vld [vmem:[%s3038_s4 + $0x14] sm:$0xf0]  ;;  %v2182_v31 = vld [vmem:[%s3038_s4 + $0x14] sm:$0xf] }
 0x31b   : > { %1456 = vmatpush.bf16.msra.mxu0 %v2027_v54  ;;  %1617 = vmatpush.bf16.msra.mxu2 %v2202_v22  ;;  %v2200_v17 = vld [vmem:[#allocation7 + $0x20] sm:$0xff]  ;;  %v1996_v36 = vld [vmem:[%s3038_s4 + $0x18] sm:$0xf0]  ;;  %v1995_v43 = vor.u32 %v2183_v16, %v1994_v11  ;;  %v1986_v29 = vld [vmem:[%s3038_s4] sm:$0xf] }
 0x31c   : > { %1469 = vmatpush.bf16.msra.mxu1 %v2031_v60  ;;  %1630 = vmatpush.bf16.msra.mxu3 %v2210_v33  ;;  %v2208_v46 = vld [vmem:[#allocation7 + $0x60] sm:$0xff]  ;;  %v1999_v41 = vor.u32 %v2182_v31, %v1996_v36  ;;  %v2181_v37 = vld [vmem:[%s3038_s4 + $0x4] sm:$0xf0]  ;;  %v2180_v15 = vld [vmem:[%s3038_s4 + $0x4] sm:$0xf] }
 0x31d   : > { %v2199_v6 = vld [vmem:[#allocation7 + $0x18] sm:$0xff]  ;;  %v1987_v30 = vor.u32 %v2181_v37, %v1986_v29  ;;  %v2198_v55 = vld [vmem:[#allocation7 + $0x10] sm:$0xff]  ;;  %v2197_v19 = vld [vmem:[#allocation7 + $0x8] sm:$0xff] }
 0x31e   : > { %v1988_v13 = vld [vmem:[%s3038_s4 + $0x8] sm:$0xf0]  ;;  %v2206_v12 = vld [vmem:[#allocation7 + $0x50] sm:$0xff]  ;;  %v2205_v24 = vld [vmem:[#allocation7 + $0x48] sm:$0xff] }
 0x31f   : > { %1457 = vmatpush.bf16.msra.mxu0 %v2019_v10  ;;  %1618 = vmatpush.bf16.msra.mxu2 %v2201_v51  ;;  %v2207_v18 = vld [vmem:[#allocation7 + $0x58] sm:$0xff]  ;;  %v1991_v45 = vor.u32 %v2180_v15, %v1988_v13  ;;  %v2196_v32 = vld [vmem:[#allocation7] sm:$0xff]  ;;  %v1368_v44 = vld [vmem:[%s3039_s5] sm:$0x3] }
 0x320   : > { %1470 = vmatpush.bf16.msra.mxu1 %v2023_v56  ;;  %1631 = vmatpush.bf16.msra.mxu3 %v2209_v3  ;;  %v2204_v0 = vld [vmem:[#allocation7 + $0x40] sm:$0xff]  ;;  %v1370_v58 = vperm.slane %v1368_v44, 0  ;;  %v1371_v59 = vperm.slane %v1368_v44, 1  ;;  %v2310_v49 = vld [vmem:[%s3041_s7] ss:$0 sm:$0xff] }
 0x323   : > { %1458 = vmatpush.bf16.msra.mxu0 %v2011_v34  ;;  %1619 = vmatpush.bf16.msra.mxu2 %v2200_v17 }
 0x324   : > { %1471 = vmatpush.bf16.msra.mxu1 %v2015_v35  ;;  %1632 = vmatpush.bf16.msra.mxu3 %v2208_v46 }
 0x327   : > { %1459 = vmatpush.bf16.msra.mxu0 %v2003_v4  ;;  %1620 = vmatpush.bf16.msra.mxu2 %v2199_v6 }
 0x328   : > { %1472 = vmatpush.bf16.msra.mxu1 %v2007_v5  ;;  %1633 = vmatpush.bf16.msra.mxu3 %v2207_v18 }
 0x32b   : > { %1460 = vmatpush.bf16.msra.mxu0 %v1995_v43  ;;  %1621 = vmatpush.bf16.msra.mxu2 %v2198_v55 }
 0x32c   : > { %1473 = vmatpush.bf16.msra.mxu1 %v1999_v41  ;;  %1634 = vmatpush.bf16.msra.mxu3 %v2206_v12 }
 0x32f   : > { %1461 = vmatpush.bf16.msra.mxu0 %v1987_v30  ;;  %1622 = vmatpush.bf16.msra.mxu2 %v2197_v19 }
 0x330   : > { %1474 = vmatpush.bf16.msra.mxu1 %v1991_v45  ;;  %1635 = vmatpush.bf16.msra.mxu3 %v2205_v24 }
 0x332   : > { %1462 = vmatmul.bf16.vlgmr.msra.gmra.mxu0 %v1351_v63 }
 0x333   : > { %1475 = vmatmul.bf16.vlgmr.msra.gmra.mxu1 %v1351_v63  ;;  %1623 = vmatpush.bf16.msra.mxu2 %v2196_v32 }
 0x334   : > { %1636 = vmatpush.bf16.msra.mxu3 %v2204_v0 }
 0x3af   : > { %v1463_v7 = vpop.f32.mrf.mxu0 }
 0x3b0   : > { %v1464_v25 = vadd.f32 %v1463_v7, %v1370_v58  ;;  %v1476_v39 = vpop.f32.mrf.mxu1 }
 0x3b1   : > { %v1477_v1 = vadd.f32 %v1476_v39, %v1371_v59 }
 0x3b2   : > { %v1480_v21 = vmax.f32 %v1464_v25, 0.0 }
 0x3b3   : > { %v1481_v28 = vmax.f32 %v1477_v1, 0.0 }
 0x3b4   : > { %v1482_v26 = vpack.c.bf16 %v1480_v21, %v1480_v21 }
 0x3b5   : > { %v1483_v38 = vpack.c.bf16 %v1481_v28, %v1481_v28 }
 0x3b6   : > { %1624 = vmatmul.bf16.vlgmr.msra.gmra.mxu2 %v1482_v26 }
 0x3b7   : > { %1637 = vmatmul.bf16.vlgmr.msra.gmra.mxu3 %v1483_v38  ;;  %v1465_v42 = vpop.f32.mrf.mxu0 }
 0x3b8   : > { %v1478_v48 = vpop.f32.mrf.mxu1 }
 0x439   : > { %v1625_v50 = vpop.f32.mrf.mxu2 }
 0x43a   : > { %v1626_v54 = vadd.f32 %v2310_v49, %v1625_v50  ;;  %v1638_v60 = vpop.f32.mrf.mxu3 }
 0x43c   : > { %v1639_v61 = vadd.f32 %v1638_v60, %v1626_v54 }
 0x43e   : > { %1642 = vst [vmem:[%s3042_s8] sm:$0xff] %v1639_v61 }
 0x441   : > { %v1627_v62 = vpop.f32.mrf.mxu2 }
 0x442   : > { %v1640_v2 = vpop.f32.mrf.mxu3 }
 0x443 PF: > { %s20_s27 = sadd.s32 1, %s2385_s27  }
 0x444   : > { %p17_p9 = scmp.ge.s32.totalorder %s20_s27, 4  }
 0x446   :  { %19 = sbr.rel (!%p17_p9) target bundleno = 2 (0x2), region = 99 }
 0x44b   :  { %1654 = vsyncpa [#allocation6], 1 }
 0x44c   :  { %1656 = vsyncpa [#allocation6 + $0x1], 1 }
 0x44d   :  { %1657 = vsyncpa [#allocation8], 1 }

</bundles_post_ra>
